<compile_context>
chip_gen: v5e
topology: v5e:2x2
jax: 0.10.0
libtpu: 0.0.40
codegen_flags: <defaults>
</compile_context>

<pallas_src>
import functools

import jax
import jax.numpy as jnp
from jax.experimental import pallas as pl
from jax.experimental.pallas import tpu as pltpu

_LANES = 128
_SUBLANES = 8


def _wpce_kernel(logits_ref, targets_ref, part_ref, *, n_rows, tile_n):
    # logits_ref:  (tile_n, C) float (any HBM dtype; promoted to f32 here)
    # targets_ref: (tile_n, 1) int32
    # part_ref:    (1, 8, 128) f32 per-tile partials
    #              sublane 0 -> sum of (lse - picked) over valid rows
    #              sublane 1 -> count of valid rows
    i = pl.program_id(0)

    x = logits_ref[...].astype(jnp.float32)                       # (tile_n, C)
    y = targets_ref[...]                                          # (tile_n, 1)

    # Row validity: has a label AND is a real (non-padded) row of this tile.
    row_ids = i * tile_n + jax.lax.broadcasted_iota(jnp.int32, y.shape, 0)
    valid = (y != -1) & (row_ids < n_rows)                        # (tile_n, 1)

    # Numerically-stable per-row logsumexp.
    m = jnp.max(x, axis=-1, keepdims=True)                        # (tile_n, 1)
    lse = jnp.log(jnp.sum(jnp.exp(x - m), axis=-1, keepdims=True)) + m

    # x[i, y[i]] via a one-hot lane reduce (no data-dependent gather).
    cls = jax.lax.broadcasted_iota(jnp.int32, x.shape, 1)         # (tile_n, C)
    picked = jnp.sum(jnp.where(cls == y, x, 0.0), axis=-1, keepdims=True)

    # Per-row differences, masked, then reduced to tile-level partials.
    per_row = jnp.where(valid, lse - picked, 0.0)                 # (tile_n, 1)
    tile_sum = jnp.sum(per_row)
    tile_cnt = jnp.sum(valid.astype(jnp.float32))

    sub = jax.lax.broadcasted_iota(jnp.int32, (_SUBLANES, _LANES), 0)
    part_ref[0] = jnp.where(sub == 0, tile_sum,
                            jnp.where(sub == 1, tile_cnt, 0.0))


def _pick_tile_n(n_rows, n_cls, itemsize, target_block_bytes):
    """VMEM-budget-derived row tile (multiple of 8, capped by the row count)."""
    c_padded = pl.cdiv(n_cls, _LANES) * _LANES
    # Per-row VMEM bytes: logits row (lane-padded) + lane-padded int32 target.
    row_bytes = c_padded * itemsize + _LANES * 4
    tile_n = (int(target_block_bytes) // row_bytes) // _SUBLANES * _SUBLANES
    tile_n = max(_SUBLANES, tile_n)
    n_cap = max(_SUBLANES, (n_rows // _SUBLANES) * _SUBLANES)
    return min(tile_n, n_cap), row_bytes


def weighted_pos_ce_loss(inputs, targets, *, tile_n=None,
                         target_block_bytes=4 << 20):
    """inputs: (N, C) float logits (f32/bf16); targets: (N,) int (-1 = ignore)."""
    N, C = inputs.shape
    itemsize = jnp.dtype(inputs.dtype).itemsize

    derived_tile_n, row_bytes = _pick_tile_n(N, C, itemsize, target_block_bytes)
    if tile_n is None:
        tile_n = derived_tile_n
    else:
        tile_n = max(_SUBLANES, (int(tile_n) // _SUBLANES) * _SUBLANES)

    grid = (pl.cdiv(N, tile_n),)
    num_tiles = grid[0]

    # Double-buffered inputs + tiny partial blocks, with headroom, capped at
    # v7x's 64 MiB physical VMEM (v5e/v6e have 128 MiB so this is always safe).
    working = 2 * tile_n * row_bytes + 2 * _SUBLANES * _LANES * 4
    vmem_limit = int(min(max(working + (4 << 20), 16 << 20), 64 << 20))

    t2d = targets.reshape(N, 1).astype(jnp.int32)
    kernel = functools.partial(_wpce_kernel, n_rows=N, tile_n=tile_n)

    parts = pl.pallas_call(
        kernel,
        out_shape=jax.ShapeDtypeStruct((num_tiles, _SUBLANES, _LANES),
                                       jnp.float32),
        grid=grid,
        in_specs=[
            pl.BlockSpec((tile_n, C), lambda i: (i, 0)),
            pl.BlockSpec((tile_n, 1), lambda i: (i, 0)),
        ],
        out_specs=pl.BlockSpec((1, _SUBLANES, _LANES), lambda i: (i, 0, 0)),
        compiler_params=pltpu.CompilerParams(
            # Independent per-tile partials -> fully parallel (both TCs on v7x).
            dimension_semantics=("parallel",),
            vmem_limit_bytes=vmem_limit),
    )(inputs, t2d)

    # Epilogue in the wrapper: CrossEntropyLoss(reduction='mean') over labeled
    # rows; empty selection -> nan, and torch.nansum maps nan -> 0.
    total = jnp.sum(parts[:, 0, 0])
    count = jnp.sum(parts[:, 1, 0])
    mean = jnp.where(count > 0, total / jnp.maximum(count, 1.0), 0.0)
    return jnp.where(jnp.isnan(mean), 0.0, mean)


def _reference(inputs, targets):
    # Pure-JAX reference mirroring the PyTorch forward.
    mask = targets != -1
    x = inputs.astype(jnp.float32)
    lse = jax.nn.logsumexp(x, axis=-1)
    picked = jnp.take_along_axis(
        x, jnp.clip(targets, 0, x.shape[-1] - 1)[:, None], axis=-1)[:, 0]
    per_row = lse - picked
    cnt = jnp.sum(mask)
    mean = jnp.where(cnt > 0,
                     jnp.sum(jnp.where(mask, per_row, 0.0)) /
                     jnp.maximum(cnt, 1),
                     jnp.nan)
    return jnp.where(jnp.isnan(mean), 0.0, mean)  # torch.nansum on scalar


if __name__ == "__main__":
    key = jax.random.PRNGKey(0)
    k1, k2 = jax.random.split(key)

    # 300 positions, 32 classes; targets in [-1, C) with -1 meaning "no label".
    N, C = 300, 32
    inputs = jax.random.normal(k1, (N, C), dtype=jnp.float32)
    targets = jax.random.randint(k2, (N,), -1, C, dtype=jnp.int32)
    ref = _reference(inputs, targets)

    # 1) Default VMEM-budget-derived tile (one near-full tile + partial tail).
    out = jax.block_until_ready(weighted_pos_ce_loss(inputs, targets))
    assert jnp.allclose(out, ref, atol=1e-5, rtol=1e-5), (out, ref)

    # 2) Forced small tile -> several grid steps incl. a padded partial tile.
    out_small = jax.block_until_ready(
        weighted_pos_ce_loss(inputs, targets, tile_n=128))
    assert jnp.allclose(out_small, ref, atol=1e-5, rtol=1e-5), (out_small, ref)

    # 3) No labeled positions at all -> 0.0 (nansum of the nan mean).
    none = jnp.full((N,), -1, dtype=jnp.int32)
    out_none = jax.block_until_ready(weighted_pos_ce_loss(inputs, none))
    assert jnp.allclose(out_none, 0.0, atol=1e-6), out_none

    # 4) bf16 logits straight from HBM (kernel promotes to f32 internally).
    inputs_bf16 = inputs.astype(jnp.bfloat16)
    ref_bf16 = _reference(inputs_bf16, targets)
    out_bf16 = jax.block_until_ready(weighted_pos_ce_loss(inputs_bf16, targets))
    assert jnp.allclose(out_bf16, ref_bf16, atol=1e-4, rtol=1e-4), (
        out_bf16, ref_bf16)

    print("KERNEL_OK")
</pallas_src>

<mosaic_0001>
module attributes {stable_mosaic.version = 11 : i64} {
  func.func @_wpce_kernel(%arg0: i32, %arg1: memref<296x32xf32, #tpu.memory_space<vmem>>, %arg2: memref<296x1xi32, #tpu.memory_space<vmem>>, %arg3: memref<1x8x128xf32, #tpu.memory_space<vmem>>) attributes {dimension_semantics = [#tpu.dimension_semantics<parallel>], iteration_bounds = array<i64: 2>, scalar_prefetch = 0 : i64, scratch_operands = 0 : i64, tpu.core_type = #tpu.core_type<tc>, window_params = [{transform_indices = @transform_0, window_bounds = array<i64: 296, 32>}, {transform_indices = @transform_1, window_bounds = array<i64: 296, 1>}, {transform_indices = @transform_2, window_bounds = array<i64: 1, 8, 128>}]} {
    %c0 = arith.constant 0 : index
    %c0_0 = arith.constant 0 : index
    %0 = vector.load %arg1[%c0, %c0_0] : memref<296x32xf32, #tpu.memory_space<vmem>>, vector<296x32xf32>
    %c0_1 = arith.constant 0 : index
    %c0_2 = arith.constant 0 : index
    %1 = vector.load %arg2[%c0_1, %c0_2] : memref<296x1xi32, #tpu.memory_space<vmem>>, vector<296x1xi32>
    %c296_i32 = arith.constant 296 : i32
    %2 = arith.muli %arg0, %c296_i32 : i32
    %3 = tpu.iota {dimensions = array<i32: 0>} : vector<296x1xi32>
    %4 = vector.broadcast %2 : i32 to vector<296x1xi32>
    %5 = arith.addi %4, %3 : vector<296x1xi32>
    %c-1_i32 = arith.constant -1 : i32
    %6 = vector.broadcast %c-1_i32 : i32 to vector<296x1xi32>
    %7 = arith.cmpi ne, %1, %6 : vector<296x1xi32>
    %c300_i32 = arith.constant 300 : i32
    %8 = vector.broadcast %c300_i32 : i32 to vector<296x1xi32>
    %9 = arith.cmpi slt, %5, %8 : vector<296x1xi32>
    %10 = arith.andi %7, %9 : vector<296x1xi1>
    %cst = arith.constant dense<0xFF800000> : vector<296xf32>
    %11 = vector.multi_reduction <maximumf>, %0, %cst [1] : vector<296x32xf32> to vector<296xf32>
    %12 = vector.shape_cast %11 : vector<296xf32> to vector<296x1xf32>
    %13 = vector.broadcast %12 : vector<296x1xf32> to vector<296x32xf32>
    %14 = arith.subf %0, %13 : vector<296x32xf32>
    %15 = math.exp %14 : vector<296x32xf32>
    %cst_3 = arith.constant dense<0.000000e+00> : vector<296xf32>
    %16 = vector.multi_reduction <add>, %15, %cst_3 [1] : vector<296x32xf32> to vector<296xf32>
    %17 = vector.shape_cast %16 : vector<296xf32> to vector<296x1xf32>
    %18 = math.log %17 : vector<296x1xf32>
    %19 = arith.addf %18, %12 : vector<296x1xf32>
    %20 = tpu.iota {dimensions = array<i32: 1>} : vector<296x32xi32>
    %21 = vector.broadcast %1 : vector<296x1xi32> to vector<296x32xi32>
    %22 = arith.cmpi eq, %20, %21 : vector<296x32xi32>
    %cst_4 = arith.constant 0.000000e+00 : f32
    %23 = vector.broadcast %cst_4 : f32 to vector<296x32xf32>
    %24 = arith.select %22, %0, %23 : vector<296x32xi1>, vector<296x32xf32>
    %cst_5 = arith.constant dense<0.000000e+00> : vector<296xf32>
    %25 = vector.multi_reduction <add>, %24, %cst_5 [1] : vector<296x32xf32> to vector<296xf32>
    %26 = vector.shape_cast %25 : vector<296xf32> to vector<296x1xf32>
    %27 = arith.subf %19, %26 : vector<296x1xf32>
    %cst_6 = arith.constant 0.000000e+00 : f32
    %28 = vector.broadcast %cst_6 : f32 to vector<296x1xf32>
    %29 = arith.select %10, %27, %28 : vector<296x1xi1>, vector<296x1xf32>
    %30 = vector.shape_cast %29 : vector<296x1xf32> to vector<1x296x1xf32>
    %cst_7 = arith.constant dense<0.000000e+00> : vector<1xf32>
    %31 = vector.multi_reduction <add>, %30, %cst_7 [1, 2] : vector<1x296x1xf32> to vector<1xf32>
    %32 = vector.shape_cast %31 : vector<1xf32> to vector<1x1x1xf32>
    %33 = vector.extract %32[0, 0, 0] : f32 from vector<1x1x1xf32>
    %34 = arith.extui %10 : vector<296x1xi1> to vector<296x1xi32>
    %35 = arith.sitofp %34 : vector<296x1xi32> to vector<296x1xf32>
    %36 = vector.shape_cast %35 : vector<296x1xf32> to vector<1x296x1xf32>
    %cst_8 = arith.constant dense<0.000000e+00> : vector<1xf32>
    %37 = vector.multi_reduction <add>, %36, %cst_8 [1, 2] : vector<1x296x1xf32> to vector<1xf32>
    %38 = vector.shape_cast %37 : vector<1xf32> to vector<1x1x1xf32>
    %39 = vector.extract %38[0, 0, 0] : f32 from vector<1x1x1xf32>
    %40 = tpu.iota {dimensions = array<i32: 0>} : vector<8x128xi32>
    %c0_i32 = arith.constant 0 : i32
    %41 = vector.broadcast %c0_i32 : i32 to vector<8x128xi32>
    %42 = arith.cmpi eq, %40, %41 : vector<8x128xi32>
    %c1_i32 = arith.constant 1 : i32
    %43 = vector.broadcast %c1_i32 : i32 to vector<8x128xi32>
    %44 = arith.cmpi eq, %40, %43 : vector<8x128xi32>
    %cst_9 = arith.constant 0.000000e+00 : f32
    %45 = vector.broadcast %39 : f32 to vector<8x128xf32>
    %46 = vector.broadcast %cst_9 : f32 to vector<8x128xf32>
    %47 = arith.select %44, %45, %46 : vector<8x128xi1>, vector<8x128xf32>
    %48 = vector.broadcast %33 : f32 to vector<8x128xf32>
    %49 = arith.select %42, %48, %47 : vector<8x128xi1>, vector<8x128xf32>
    %c0_10 = arith.constant 0 : index
    %c0_11 = arith.constant 0 : index
    %c0_12 = arith.constant 0 : index
    %50 = vector.load %arg3[%c0_10, %c0_11, %c0_12] : memref<1x8x128xf32, #tpu.memory_space<vmem>>, vector<1x8x128xf32>
    %51 = vector.shape_cast %50 : vector<1x8x128xf32> to vector<8x128xf32>
    %52 = vector.shape_cast %49 : vector<8x128xf32> to vector<1x8x128xf32>
    tpu.vector_store %arg3[%c0_10, %c0_11, %c0_12], %52 {strides = array<i32>} : memref<1x8x128xf32, #tpu.memory_space<vmem>>, vector<1x8x128xf32>,
    return
  }
  func.func @transform_0(%arg0: i32) -> (i32, i32) {
    %c0_i32 = arith.constant 0 : i32
    %c0_i32_0 = arith.constant 0 : i32
    return %arg0, %c0_i32 : i32, i32
  }
  func.func @transform_1(%arg0: i32) -> (i32, i32) {
    %c0_i32 = arith.constant 0 : i32
    %c0_i32_0 = arith.constant 0 : i32
    return %arg0, %c0_i32 : i32, i32
  }
  func.func @transform_2(%arg0: i32) -> (i32, i32, i32) {
    %c0_i32 = arith.constant 0 : i32
    %c0_i32_0 = arith.constant 0 : i32
    %c0_i32_1 = arith.constant 0 : i32
    return %arg0, %c0_i32, %c0_i32_0 : i32, i32, i32
  }
}

</mosaic_0001>

<bundles_post_ra>
// kernel: tpu_custom_call.1
= control target key start
LH: loop header
LB: loop body
LE: loop exit
PB: predicated region body
PF: predicated region fallthrough
CT: control target
= control target key end

     0   :  { %7 = vsyncpa [#allocation3], 0  ;;  %s3491_s0 = inlined_call_operand.vmem [shape: f32[300,32], index: 0, kind: input, shape index: {}]   ;;  %s3492_s1 = inlined_call_operand.vmem [shape: s32[300,1], index: 1, kind: input, shape index: {}]   ;;  %s3493_s2 = inlined_call_operand.hbm [shape: f32[2,8,128], index: 2, kind: output, shape index: {}]  }
   0x1   :  { %9 = vsyncpa [#allocation3 + $0x1], 0  ;;  %s1979_s9 = smov 0   ;;  %s1981_s10 = smov 0  }
   0x2   :  { %s1983_s11 = smov 0   ;;  %s1985_s12 = smov 0  }
   0x3 LB: > { %s2000_s13 = sadd.s32 4294967295, %s1960_s12   ;;  %s1618_s14 = sadd.s32 4294967294, %s1960_s12   ;;  %s1960_s12 = sphi %s1985_s12, %s3695_s12   ;;  %s1956_s11 = sphi %s1983_s11, %s3694_s11   ;;  %s1952_s10 = sphi %s1981_s10, %s3693_s10   ;;  %s1948_s9 = sphi %s1979_s9, %s3692_s9  }
   0x4   : > { %s2004_s15 = sadd.s32 1, %s1960_s12   ;;  %s74_s16 = sadd.s32 1, %s1956_s11 }
   0x5   : > { %s71_s17 = ssub.s32 %s1960_s12, %s2004_s15  ;;  %p84_p0 = scmp.ne.s32.totalorder %s1956_s11, %s1952_s10 }
   0x6   : > { %p72_p1 = scmp.eq.s32.totalorder %s71_s17, 0  ;;  %p85_p2 = scmp.eq.s32.totalorder %s2000_s13, 1 }
   0x7   : > { %p90_p3 = scmp.ne.s32.totalorder %s1952_s10, %s1948_s9  ;;  %p91_p4 = scmp.eq.s32.totalorder %s1618_s14, 1 }
   0x8   : > { %s2015_s18 = scalar_select %p72_p1, %s1956_s11, %s74_s16  }
   0x9   : > { %p2017_p5 = por %p85_p2, %p84_p0  ;;  %p2021_p6 = por %p91_p4, %p90_p3 }
   0xa   : > { %p1621_p7 = scmp.ge.s32.totalorder %s1960_s12, 1  ;;  %p143_p8 = scmp.lt.s32.totalorder %s1960_s12, 3 }
   0xc   : > { %p144_p9 = pnand %p1621_p7, %p143_p8 }
   0xe   : > { %147 = sbr.rel (%p144_p9) target bundleno = 1098 (0x44a), region = 28 }
  0x13   : > { %s178_s21 = smul.u32 37, %s2000_s13  ;;  %vm468_vm0 = vcmask 261120   ;;  %vm1285_vm15 = vcmask 7168   ;;  %s175_s30 = sand.u32 1, %s1952_s10  }
  0x14   : > { %s280_s29 = smul.u32 296, %s2000_s13  ;;  %s1622_s3 = sshll.u32 %s175_s30, 3 }
  0x15   : > { %p183_p10 = scmp.lt.s32.totalorder %s178_s21, 37  ;;  %s1663_s4 = sshll.u32 %s2000_s13, 3 }
  0x16   : > { %s1542_s7 = scalar_lea.hbm %s3493_s2, %s1663_s4  ;;  %s177_s8 = scalar_lea.vmem [#allocation2], %s1622_s3 }
  0x17   : > { %s3697_s21 = smov (!%p183_p10, %s178_s21), 37  ;;  %s1544_s14 = sshll.u32 %s177_s8, 4  ;;  %s1545_s14 = int_to_ptr.vmem [resolvable:$true] %s1544_s14 }
  0x18   : > { %s1623_s22 = sshll.u32 %s3697_s21, 3  ;;  %s1546_s17 = sshll.u32 %s1542_s7, 4  ;;  %s1547_s17 = int_to_ptr.hbm [resolvable:$true] %s1546_s17 }
  0x19   : > { %s2036_s25 = scalar_lea.vmem %s3491_s0, %s1623_s22  ;;  %s2413_s28 = scalar_lea.vmem %s3492_s1, %s1623_s22 }
  0x1a   : > { %v2039_v0 = vld [vmem:[%s2036_s25 + $0x20] sm:$0xff]  ;;  %v2042_v1 = vld [vmem:[%s2036_s25 + $0x10] sm:$0xff]  ;;  %v2054_v6 = vld [vmem:[%s2036_s25 + $0x28] sm:$0xff]  ;;  %s1532_s13 = scalar_lea.sflag [#allocation3], %s175_s30  ;;  %s1912_s22 = sshra.s32 %s1547_s17, 4  ;;  %s1913_s22 = int_to_ptr.hbm [resolvable:$true] %s1912_s22 }
  0x1b   : > { %v2045_v2 = vld [vmem:[%s2036_s25] sm:$0xff]  ;;  %v481_v3 = vsel %vm468_vm0, %v2039_v0, -inf  ;;  %v475_v4 = vsel %vm468_vm0, %v2042_v1, -inf  ;;  %v2057_v7 = vld [vmem:[%s2036_s25 + $0x18] sm:$0xff]  ;;  %v2060_v8 = vld [vmem:[%s2036_s25 + $0x8] sm:$0xff]  ;;  %v484_v9 = vsel %vm468_vm0, %v2054_v6, -inf  ;;  %p1919_p0 = scmp.lt.s32.totalorder %s1913_s22, %s3493_s2 }
  0x1c   : > { %v469_v5 = vsel %vm468_vm0, %v2045_v2, -inf  ;;  %482 = vmax.xlane.f32.xlu2 %v481_v3  ;;  %476 = vmax.xlane.f32.xlu1 %v475_v4  ;;  %v478_v10 = vsel %vm468_vm0, %v2057_v7, -inf  ;;  %v472_v11 = vsel %vm468_vm0, %v2060_v8, -inf  ;;  %v2069_v12 = vld [vmem:[%s2036_s25 + $0x40] sm:$0xff]  ;;  %v2072_v13 = vld [vmem:[%s2036_s25 + $0x38] sm:$0xff]  ;;  %v2075_v14 = vld [vmem:[%s2036_s25 + $0x30] sm:$0xff] }
  0x1d   : > { %470 = vmax.xlane.f32.xlu0 %v469_v5  ;;  %v493_v15 = vsel %vm468_vm0, %v2069_v12, -inf  ;;  %v490_v16 = vsel %vm468_vm0, %v2072_v13, -inf  ;;  %v487_v17 = vsel %vm468_vm0, %v2075_v14, -inf  ;;  %v2084_v18 = vld [vmem:[%s2036_s25 + $0x58] sm:$0xff]  ;;  %v2087_v19 = vld [vmem:[%s2036_s25 + $0x50] sm:$0xff]  ;;  %v2090_v20 = vld [vmem:[%s2036_s25 + $0x48] sm:$0xff] }
  0x1e   : > { %v502_v21 = vsel %vm468_vm0, %v2084_v18, -inf  ;;  %v499_v22 = vsel %vm468_vm0, %v2087_v19, -inf  ;;  %v496_v23 = vsel %vm468_vm0, %v2090_v20, -inf  ;;  %v2099_v24 = vld [vmem:[%s2036_s25 + $0x70] sm:$0xff]  ;;  %v2102_v25 = vld [vmem:[%s2036_s25 + $0x68] sm:$0xff]  ;;  %v2105_v26 = vld [vmem:[%s2036_s25 + $0x60] sm:$0xff] }
  0x1f   : > { %v511_v27 = vsel %vm468_vm0, %v2099_v24, -inf  ;;  %v508_v28 = vsel %vm468_vm0, %v2102_v25, -inf  ;;  %v505_v29 = vsel %vm468_vm0, %v2105_v26, -inf  ;;  %v2114_v30 = vld [vmem:[%s2036_s25 + $0x88] sm:$0xff]  ;;  %v2117_v31 = vld [vmem:[%s2036_s25 + $0x80] sm:$0xff]  ;;  %v2120_v32 = vld [vmem:[%s2036_s25 + $0x78] sm:$0xff] }
  0x20   : > { %v520_v33 = vsel %vm468_vm0, %v2114_v30, -inf  ;;  %v517_v34 = vsel %vm468_vm0, %v2117_v31, -inf  ;;  %v514_v35 = vsel %vm468_vm0, %v2120_v32, -inf  ;;  %v2129_v36 = vld [vmem:[%s2036_s25 + $0xa0] sm:$0xff]  ;;  %v2132_v37 = vld [vmem:[%s2036_s25 + $0x98] sm:$0xff]  ;;  %v2135_v38 = vld [vmem:[%s2036_s25 + $0x90] sm:$0xff] }
  0x21   : > { %v529_v39 = vsel %vm468_vm0, %v2129_v36, -inf  ;;  %v526_v40 = vsel %vm468_vm0, %v2132_v37, -inf  ;;  %v523_v41 = vsel %vm468_vm0, %v2135_v38, -inf  ;;  %v2144_v42 = vld [vmem:[%s2036_s25 + $0xb8] sm:$0xff]  ;;  %v2147_v43 = vld [vmem:[%s2036_s25 + $0xb0] sm:$0xff]  ;;  %v2150_v44 = vld [vmem:[%s2036_s25 + $0xa8] sm:$0xff] }
  0x22   : > { %v538_v45 = vsel %vm468_vm0, %v2144_v42, -inf  ;;  %v535_v46 = vsel %vm468_vm0, %v2147_v43, -inf  ;;  %v532_v47 = vsel %vm468_vm0, %v2150_v44, -inf  ;;  %v2159_v48 = vld [vmem:[%s2036_s25 + $0xd0] sm:$0xff]  ;;  %v2162_v49 = vld [vmem:[%s2036_s25 + $0xc8] sm:$0xff]  ;;  %v2165_v50 = vld [vmem:[%s2036_s25 + $0xc0] sm:$0xff] }
  0x23   : > { %v547_v51 = vsel %vm468_vm0, %v2159_v48, -inf  ;;  %v544_v52 = vsel %vm468_vm0, %v2162_v49, -inf  ;;  %v541_v53 = vsel %vm468_vm0, %v2165_v50, -inf  ;;  %v2174_v54 = vld [vmem:[%s2036_s25 + $0xe8] sm:$0xff]  ;;  %v2177_v55 = vld [vmem:[%s2036_s25 + $0xe0] sm:$0xff]  ;;  %v2180_v56 = vld [vmem:[%s2036_s25 + $0xd8] sm:$0xff] }
  0x24   : > { %485 = vmax.xlane.f32.xlu2 %v484_v9  ;;  %479 = vmax.xlane.f32.xlu1 %v478_v10  ;;  %v556_v57 = vsel %vm468_vm0, %v2174_v54, -inf  ;;  %v553_v58 = vsel %vm468_vm0, %v2177_v55, -inf  ;;  %v550_v59 = vsel %vm468_vm0, %v2180_v56, -inf  ;;  %v2189_v60 = vld [vmem:[%s2036_s25 + $0x100] sm:$0xff]  ;;  %v2192_v61 = vld [vmem:[%s2036_s25 + $0xf8] sm:$0xff]  ;;  %v2195_v62 = vld [vmem:[%s2036_s25 + $0xf0] sm:$0xff] }
  0x25   : > { %473 = vmax.xlane.f32.xlu0 %v472_v11  ;;  %v565_v63 = vsel %vm468_vm0, %v2189_v60, -inf  ;;  %v562_v3 = vsel %vm468_vm0, %v2192_v61, -inf  ;;  %v559_v4 = vsel %vm468_vm0, %v2195_v62, -inf  ;;  %v2204_v5 = vld [vmem:[%s2036_s25 + $0x118] sm:$0xff]  ;;  %v2207_v9 = vld [vmem:[%s2036_s25 + $0x110] sm:$0xff]  ;;  %v2210_v10 = vld [vmem:[%s2036_s25 + $0x108] sm:$0xff] }
  0x26   : > { %v574_v11 = vsel %vm468_vm0, %v2204_v5, -inf  ;;  %s1914_s23 = scalar_lea.hbm %s1913_s22, 8  ;;  %s1918_s26 = scalar_lea.hbm %s3493_s2, 16 }
  0x27   : > { %p1915_p11 = scmp.ne.s32.totalorder %s1913_s22, %s1914_s23  ;;  %p1920_p1 = scmp.lt.s32.totalorder %s1918_s26, %s1914_s23 }
  0x29   : > { %p1916_p12 = pnand %p1915_p11, %p2017_p5  ;;  %p1921_p2 = por %p1920_p1, %p1919_p0 }
  0x2b   : > { %p1917_p13 = pneg %p1916_p12 }
  0x2c   : > { %494 = vmax.xlane.f32.xlu2 %v493_v15  ;;  %491 = vmax.xlane.f32.xlu1 %v490_v16  ;;  %v571_v15 = vsel %vm468_vm0, %v2207_v9, -inf  ;;  %v568_v16 = vsel %vm468_vm0, %v2210_v10, -inf }
  0x2d   : > { %488 = vmax.xlane.f32.xlu0 %v487_v17  ;;  %v2219_v17 = vld [vmem:[%s2036_s25 + $0x120] sm:$0xff]  ;;  %p1922_p3 = pnand %p1921_p2, %p1917_p13 }
  0x34   : > { %503 = vmax.xlane.f32.xlu2 %v502_v21  ;;  %500 = vmax.xlane.f32.xlu1 %v499_v22  ;;  %v577_v21 = vsel %vm468_vm0, %v2219_v17, -inf }
  0x35   : > { %497 = vmax.xlane.f32.xlu0 %v496_v23 }
  0x3c   : > { %512 = vmax.xlane.f32.xlu2 %v511_v27  ;;  %509 = vmax.xlane.f32.xlu1 %v508_v28 }
  0x3d   : > { %506 = vmax.xlane.f32.xlu0 %v505_v29 }
  0x44   : > { %521 = vmax.xlane.f32.xlu2 %v520_v33  ;;  %518 = vmax.xlane.f32.xlu1 %v517_v34 }
  0x45   : > { %515 = vmax.xlane.f32.xlu0 %v514_v35 }
  0x4c   : > { %530 = vmax.xlane.f32.xlu2 %v529_v39  ;;  %527 = vmax.xlane.f32.xlu1 %v526_v40 }
  0x4d   : > { %524 = vmax.xlane.f32.xlu0 %v523_v41 }
  0x54   : > { %539 = vmax.xlane.f32.xlu2 %v538_v45  ;;  %536 = vmax.xlane.f32.xlu1 %v535_v46 }
  0x55   : > { %533 = vmax.xlane.f32.xlu0 %v532_v47 }
  0x5c   : > { %548 = vmax.xlane.f32.xlu2 %v547_v51  ;;  %545 = vmax.xlane.f32.xlu1 %v544_v52 }
  0x5d   : > { %542 = vmax.xlane.f32.xlu0 %v541_v53 }
  0x64   : > { %557 = vmax.xlane.f32.xlu2 %v556_v57  ;;  %554 = vmax.xlane.f32.xlu1 %v553_v58 }
  0x65   : > { %551 = vmax.xlane.f32.xlu0 %v550_v59 }
  0x6c   : > { %566 = vmax.xlane.f32.xlu2 %v565_v63  ;;  %563 = vmax.xlane.f32.xlu1 %v562_v3 }
  0x6d   : > { %560 = vmax.xlane.f32.xlu0 %v559_v4 }
  0x74   : > { %575 = vmax.xlane.f32.xlu2 %v574_v11  ;;  %572 = vmax.xlane.f32.xlu1 %v571_v15 }
  0x75   : > { %569 = vmax.xlane.f32.xlu0 %v568_v16 }
  0x7d   : > { %578 = vmax.xlane.f32.xlu0 %v577_v21 }
  0x8f   : > { %v2223_v22 = vpop.xlane.xlu2 %482  ;;  %v2225_v23 = vpop.xlane.xlu1 %476 }
  0x90   : > { %v582_v27 = vsub.f32 %v2042_v1, %v2225_v23  ;;  %v2229_v28 = vpop.xlane.xlu0 %470  ;;  %v584_v47 = vsub.f32 %v2039_v0, %v2223_v22 }
  0x91   : > { %v580_v29 = vsub.f32 %v2045_v2, %v2229_v28 }
  0x92   : > { %v621_v33 = vmul.f32 1.442695, %v582_v27  ;;  %v625_v3 = vmul.f32 1.442695, %v584_v47 }
  0x93   : > { %v617_v34 = vmul.f32 1.442695, %v580_v29 }
  0x94   : > { %1714 = vpow2.f32 %v621_v33 }
  0x95   : > { %1716 = vpow2.f32 %v617_v34 }
  0x97   : > { %v2233_v35 = vpop.xlane.xlu2 %485  ;;  %v2235_v39 = vpop.xlane.xlu1 %479 }
  0x98   : > { %v585_v40 = vsub.f32 %v2054_v6, %v2233_v35  ;;  %v583_v41 = vsub.f32 %v2057_v7, %v2235_v39  ;;  %v2241_v45 = vpop.xlane.xlu0 %473 }
  0x99   : > { %v581_v46 = vsub.f32 %v2060_v8, %v2241_v45 }
  0x9a   : > { %v627_v51 = vmul.f32 1.442695, %v585_v40  ;;  %v623_v52 = vmul.f32 1.442695, %v583_v41  ;;  %v1715_v53 = vpop.eup %1714 }
  0x9b   : > { %v619_v57 = vmul.f32 1.442695, %v581_v46  ;;  %v1717_v58 = vpop.eup %1716  ;;  %v697_v59 = vsel %vm468_vm0, %v1715_v53, 0.0 }
  0x9c   : > { %1718 = vpow2.f32 %v627_v51  ;;  %698 = vadd.xlane.f32.xlu0 %v697_v59  ;;  %v691_v63 = vsel %vm468_vm0, %v1717_v58, 0.0 }
  0x9d   : > { %1720 = vpow2.f32 %v623_v52  ;;  %692 = vadd.xlane.f32.xlu1 %v691_v63 }
  0x9e   : > { %1722 = vpow2.f32 %v619_v57 }
  0x9f   : > { %v2249_v4 = vpop.xlane.xlu2 %494  ;;  %v2251_v11 = vpop.xlane.xlu1 %491  ;;  %1724 = vpow2.f32 %v625_v3 }
  0xa0   : > { %v588_v15 = vsub.f32 %v2069_v12, %v2249_v4  ;;  %v2255_v16 = vpop.xlane.xlu0 %488  ;;  %v587_v33 = vsub.f32 %v2072_v13, %v2251_v11 }
  0xa1   : > { %v586_v21 = vsub.f32 %v2075_v14, %v2255_v16 }
  0xa2   : > { %v1719_v27 = vpop.eup %1718  ;;  %v633_v29 = vmul.f32 1.442695, %v588_v15  ;;  %v631_v52 = vmul.f32 1.442695, %v587_v33 }
  0xa3   : > { %v1721_v34 = vpop.eup %1720  ;;  %v629_v40 = vmul.f32 1.442695, %v586_v21  ;;  %v706_v41 = vsel %vm468_vm0, %v1719_v27, 0.0 }
  0xa4   : > { %v1723_v46 = vpop.eup %1722  ;;  %1726 = vpow2.f32 %v633_v29  ;;  %v700_v47 = vsel %vm468_vm0, %v1721_v34, 0.0  ;;  %707 = vadd.xlane.f32.xlu0 %v706_v41 }
  0xa5   : > { %1728 = vpow2.f32 %v629_v40  ;;  %v694_v51 = vsel %vm468_vm0, %v1723_v46, 0.0  ;;  %701 = vadd.xlane.f32.xlu1 %v700_v47  ;;  %v1725_v58 = vpop.eup %1724 }
  0xa6   : > { %695 = vadd.xlane.f32.xlu2 %v694_v51  ;;  %1730 = vpow2.f32 %v631_v52  ;;  %v703_v40 = vsel %vm468_vm0, %v1725_v58, 0.0 }
  0xa7   : > { %v2264_v53 = vpop.xlane.xlu2 %503  ;;  %v2266_v57 = vpop.xlane.xlu1 %500 }
  0xa8   : > { %v591_v59 = vsub.f32 %v2084_v18, %v2264_v53  ;;  %v2270_v63 = vpop.xlane.xlu0 %497  ;;  %v590_v27 = vsub.f32 %v2087_v19, %v2266_v57 }
  0xa9   : > { %v589_v3 = vsub.f32 %v2090_v20, %v2270_v63 }
  0xaa   : > { %v1727_v15 = vpop.eup %1726  ;;  %v639_v21 = vmul.f32 1.442695, %v591_v59  ;;  %v637_v41 = vmul.f32 1.442695, %v590_v27 }
  0xab   : > { %v1729_v29 = vpop.eup %1728  ;;  %v635_v33 = vmul.f32 1.442695, %v589_v3  ;;  %v715_v34 = vsel %vm468_vm0, %v1727_v15, 0.0 }
  0xac   : > { %1732 = vpow2.f32 %v639_v21  ;;  %v709_v18 = vsel %vm468_vm0, %v1729_v29, 0.0  ;;  %716 = vadd.xlane.f32.xlu0 %v715_v34  ;;  %v1731_v51 = vpop.eup %1730 }
  0xad   : > { %1734 = vpow2.f32 %v635_v33  ;;  %710 = vadd.xlane.f32.xlu1 %v709_v18  ;;  %v712_v33 = vsel %vm468_vm0, %v1731_v51, 0.0 }
  0xae   : > { %704 = vadd.xlane.f32.xlu2 %v703_v40  ;;  %1736 = vpow2.f32 %v637_v41 }
  0xaf   : > { %v2279_v46 = vpop.xlane.xlu2 %512  ;;  %v2281_v47 = vpop.xlane.xlu1 %509 }
  0xb0   : > { %3524 = vst [vmem:[#allocation5_spill] sm:$0xff] %v2279_v46  ;;  %v594_v19 = vsub.f32 %v2099_v24, %v2279_v46  ;;  %v2285_v52 = vpop.xlane.xlu0 %506  ;;  %v593_v15 = vsub.f32 %v2102_v25, %v2281_v47 }
  0xb1   : > { %3525 = vst [vmem:[#allocation6_spill] sm:$0xff] %v2281_v47  ;;  %v592_v58 = vsub.f32 %v2105_v26, %v2285_v52  ;;  %v278_v47 = vld [vmem:[%s2413_s28 + $0x118] sm:$0xff] }
  0xb2   : > { %v1733_v59 = vpop.eup %1732  ;;  %v645_v3 = vmul.f32 1.442695, %v594_v19  ;;  %v643_v26 = vmul.f32 1.442695, %v593_v15 }
  0xb3   : > { %v1735_v21 = vpop.eup %1734  ;;  %v641_v27 = vmul.f32 1.442695, %v592_v58  ;;  %v724_v29 = vsel %vm468_vm0, %v1733_v59, 0.0 }
  0xb4   : > { %1738 = vpow2.f32 %v645_v3  ;;  %v718_v24 = vsel %vm468_vm0, %v1735_v21, 0.0  ;;  %725 = vadd.xlane.f32.xlu0 %v724_v29  ;;  %v1737_v18 = vpop.eup %1736 }
  0xb5   : > { %1740 = vpow2.f32 %v641_v27  ;;  %719 = vadd.xlane.f32.xlu1 %v718_v24  ;;  %v721_v27 = vsel %vm468_vm0, %v1737_v18, 0.0 }
  0xb6   : > { %713 = vadd.xlane.f32.xlu2 %v712_v33  ;;  %1742 = vpow2.f32 %v643_v26 }
  0xb7   : > { %v2294_v34 = vpop.xlane.xlu2 %521  ;;  %v2296_v40 = vpop.xlane.xlu1 %518 }
  0xb8   : > { %3526 = vst [vmem:[#allocation7_spill] sm:$0xff] %v2294_v34  ;;  %v597_v25 = vsub.f32 %v2114_v30, %v2294_v34  ;;  %v2300_v41 = vpop.xlane.xlu0 %515  ;;  %v596_v59 = vsub.f32 %v2117_v31, %v2296_v40 }
  0xb9   : > { %3527 = vst [vmem:[#allocation8_spill] sm:$0xff] %v2296_v40  ;;  %v595_v51 = vsub.f32 %v2120_v32, %v2300_v41 }
  0xba   : > { %v1739_v19 = vpop.eup %1738  ;;  %v651_v58 = vmul.f32 1.442695, %v597_v25  ;;  %v649_v32 = vmul.f32 1.442695, %v596_v59 }
  0xbb   : > { %v1741_v3 = vpop.eup %1740  ;;  %v647_v15 = vmul.f32 1.442695, %v595_v51  ;;  %v733_v21 = vsel %vm468_vm0, %v1739_v19, 0.0 }
  0xbc   : > { %1744 = vpow2.f32 %v651_v58  ;;  %v727_v30 = vsel %vm468_vm0, %v1741_v3, 0.0  ;;  %734 = vadd.xlane.f32.xlu0 %v733_v21  ;;  %v1743_v24 = vpop.eup %1742 }
  0xbd   : > { %1746 = vpow2.f32 %v647_v15  ;;  %728 = vadd.xlane.f32.xlu1 %v727_v30  ;;  %v730_v15 = vsel %vm468_vm0, %v1743_v24, 0.0 }
  0xbe   : > { %722 = vadd.xlane.f32.xlu2 %v721_v27  ;;  %1748 = vpow2.f32 %v649_v32 }
  0xbf   : > { %v2309_v29 = vpop.xlane.xlu2 %530  ;;  %v2311_v33 = vpop.xlane.xlu1 %527 }
  0xc0   : > { %3528 = vst [vmem:[#allocation9_spill] sm:$0xff] %v2309_v29  ;;  %v600_v31 = vsub.f32 %v2129_v36, %v2309_v29  ;;  %v2315_v26 = vpop.xlane.xlu0 %524  ;;  %v599_v19 = vsub.f32 %v2132_v37, %v2311_v33 }
  0xc1   : > { %3529 = vst [vmem:[#allocation10_spill] sm:$0xff] %v2311_v33  ;;  %v598_v18 = vsub.f32 %v2135_v38, %v2315_v26 }
  0xc2   : > { %3530 = vst [vmem:[#allocation11_spill] sm:$0xff] %v2315_v26  ;;  %v1745_v25 = vpop.eup %1744  ;;  %v657_v51 = vmul.f32 1.442695, %v600_v31  ;;  %v655_v38 = vmul.f32 1.442695, %v599_v19 }
  0xc3   : > { %v1747_v58 = vpop.eup %1746  ;;  %v653_v59 = vmul.f32 1.442695, %v598_v18  ;;  %v742_v3 = vsel %vm468_vm0, %v1745_v25, 0.0 }
  0xc4   : > { %1750 = vpow2.f32 %v657_v51  ;;  %v736_v36 = vsel %vm468_vm0, %v1747_v58, 0.0  ;;  %743 = vadd.xlane.f32.xlu0 %v742_v3  ;;  %v1749_v30 = vpop.eup %1748 }
  0xc5   : > { %1752 = vpow2.f32 %v653_v59  ;;  %737 = vadd.xlane.f32.xlu1 %v736_v36  ;;  %v739_v59 = vsel %vm468_vm0, %v1749_v30, 0.0 }
  0xc6   : > { %731 = vadd.xlane.f32.xlu2 %v730_v15  ;;  %1754 = vpow2.f32 %v655_v38 }
  0xc7   : > { %v2324_v21 = vpop.xlane.xlu2 %539  ;;  %v2326_v27 = vpop.xlane.xlu1 %536 }
  0xc8   : > { %3531 = vst [vmem:[#allocation12_spill] sm:$0xff] %v2324_v21  ;;  %v603_v37 = vsub.f32 %v2144_v42, %v2324_v21  ;;  %v2330_v32 = vpop.xlane.xlu0 %533  ;;  %v602_v25 = vsub.f32 %v2147_v43, %v2326_v27 }
  0xc9   : > { %3532 = vst [vmem:[#allocation13_spill] sm:$0xff] %v2326_v27  ;;  %v601_v24 = vsub.f32 %v2150_v44, %v2330_v32 }
  0xca   : > { %3533 = vst [vmem:[#allocation14_spill] sm:$0xff] %v2330_v32  ;;  %v1751_v31 = vpop.eup %1750  ;;  %v663_v18 = vmul.f32 1.442695, %v603_v37  ;;  %v661_v44 = vmul.f32 1.442695, %v602_v25 }
  0xcb   : > { %v1753_v51 = vpop.eup %1752  ;;  %v659_v19 = vmul.f32 1.442695, %v601_v24  ;;  %v751_v58 = vsel %vm468_vm0, %v1751_v31, 0.0 }
  0xcc   : > { %1756 = vpow2.f32 %v663_v18  ;;  %v745_v42 = vsel %vm468_vm0, %v1753_v51, 0.0  ;;  %752 = vadd.xlane.f32.xlu0 %v751_v58  ;;  %v1755_v36 = vpop.eup %1754 }
  0xcd   : > { %1758 = vpow2.f32 %v659_v19  ;;  %746 = vadd.xlane.f32.xlu1 %v745_v42  ;;  %v748_v19 = vsel %vm468_vm0, %v1755_v36, 0.0 }
  0xce   : > { %740 = vadd.xlane.f32.xlu2 %v739_v59  ;;  %1760 = vpow2.f32 %v661_v44 }
  0xcf   : > { %v2339_v3 = vpop.xlane.xlu2 %548  ;;  %v2341_v15 = vpop.xlane.xlu1 %545 }
  0xd0   : > { %3534 = vst [vmem:[#allocation15_spill] sm:$0xff] %v2339_v3  ;;  %v606_v43 = vsub.f32 %v2159_v48, %v2339_v3  ;;  %v2345_v38 = vpop.xlane.xlu0 %542  ;;  %v605_v31 = vsub.f32 %v2162_v49, %v2341_v15  ;;  %v2494_v3 = vld [vmem:[%s2413_s28 + $0x50] sm:$0xff] }
  0xd1   : > { %3535 = vst [vmem:[#allocation16_spill] sm:$0xff] %v2341_v15  ;;  %v604_v30 = vsub.f32 %v2165_v50, %v2345_v38 }
  0xd2   : > { %3536 = vst [vmem:[#allocation17_spill] sm:$0xff] %v2345_v38  ;;  %v1757_v37 = vpop.eup %1756  ;;  %v669_v24 = vmul.f32 1.442695, %v606_v43  ;;  %v667_v50 = vmul.f32 1.442695, %v605_v31 }
  0xd3   : > { %v1759_v18 = vpop.eup %1758  ;;  %v665_v25 = vmul.f32 1.442695, %v604_v30  ;;  %v760_v51 = vsel %vm468_vm0, %v1757_v37, 0.0 }
  0xd4   : > { %1762 = vpow2.f32 %v669_v24  ;;  %v754_v48 = vsel %vm468_vm0, %v1759_v18, 0.0  ;;  %761 = vadd.xlane.f32.xlu0 %v760_v51  ;;  %v1761_v42 = vpop.eup %1760 }
  0xd5   : > { %1764 = vpow2.f32 %v665_v25  ;;  %755 = vadd.xlane.f32.xlu1 %v754_v48  ;;  %v757_v25 = vsel %vm468_vm0, %v1761_v42, 0.0  ;;  %v1962_v48 = vmov 0  }
  0xd6   : > { %749 = vadd.xlane.f32.xlu2 %v748_v19  ;;  %1766 = vpow2.f32 %v667_v50  ;;  %1712 = vset.pattern.permute.xlu0 %v1962_v48 }
  0xd7   : > { %v2354_v58 = vpop.xlane.xlu2 %557  ;;  %v2356_v59 = vpop.xlane.xlu1 %554  ;;  %1711 = vset.pattern.permute.xlu2 %v1962_v48  ;;  %1713 = vset.pattern.permute.xlu1 %v1962_v48 }
  0xd8   : > { %3537 = vst [vmem:[#allocation18_spill] sm:$0xff] %v2354_v58  ;;  %v609_v49 = vsub.f32 %v2174_v54, %v2354_v58  ;;  %v2360_v44 = vpop.xlane.xlu0 %551  ;;  %v608_v37 = vsub.f32 %v2177_v55, %v2356_v59 }
  0xd9   : > { %3538 = vst [vmem:[#allocation19_spill] sm:$0xff] %v2356_v59  ;;  %v607_v36 = vsub.f32 %v2180_v56, %v2360_v44 }
  0xda   : > { %3539 = vst [vmem:[#allocation20_spill] sm:$0xff] %v2360_v44  ;;  %v1763_v43 = vpop.eup %1762  ;;  %v675_v30 = vmul.f32 1.442695, %v609_v49  ;;  %v673_v56 = vmul.f32 1.442695, %v608_v37 }
  0xdb   : > { %v1765_v24 = vpop.eup %1764  ;;  %v671_v31 = vmul.f32 1.442695, %v607_v36  ;;  %v769_v18 = vsel %vm468_vm0, %v1763_v43, 0.0 }
  0xdc   : > { %1768 = vpow2.f32 %v675_v30  ;;  %v763_v54 = vsel %vm468_vm0, %v1765_v24, 0.0  ;;  %770 = vadd.xlane.f32.xlu0 %v769_v18  ;;  %v1767_v55 = vpop.eup %1766 }
  0xdd   : > { %1770 = vpow2.f32 %v671_v31  ;;  %764 = vadd.xlane.f32.xlu1 %v763_v54  ;;  %v766_v18 = vsel %vm468_vm0, %v1767_v55, 0.0 }
  0xde   : > { %758 = vadd.xlane.f32.xlu2 %v757_v25  ;;  %1772 = vpow2.f32 %v673_v56 }
  0xdf   : > { %v2369_v51 = vpop.xlane.xlu2 %566  ;;  %v2371_v19 = vpop.xlane.xlu1 %563 }
  0xe0   : > { %3540 = vst [vmem:[#allocation21_spill] sm:$0xff] %v2369_v51  ;;  %v612_v50 = vsub.f32 %v2189_v60, %v2369_v51  ;;  %v2375_v42 = vpop.xlane.xlu0 %560  ;;  %v611_v30 = vsub.f32 %v2192_v61, %v2371_v19 }
  0xe1   : > { %3541 = vst [vmem:[#allocation22_spill] sm:$0xff] %v2371_v19  ;;  %v610_v49 = vsub.f32 %v2195_v62, %v2375_v42 }
  0xe2   : > { %3542 = vst [vmem:[#allocation23_spill] sm:$0xff] %v2375_v42  ;;  %v1769_v36 = vpop.eup %1768  ;;  %v681_v43 = vmul.f32 1.442695, %v612_v50  ;;  %v679_v62 = vmul.f32 1.442695, %v611_v30  ;;  %v2470_v42 = vld [vmem:[%s2413_s28 + $0x30] sm:$0xff] }
  0xe3   : > { %v1771_v37 = vpop.eup %1770  ;;  %v677_v24 = vmul.f32 1.442695, %v610_v49  ;;  %v778_v31 = vsel %vm468_vm0, %v1769_v36, 0.0 }
  0xe4   : > { %1774 = vpow2.f32 %v681_v43  ;;  %v772_v60 = vsel %vm468_vm0, %v1771_v37, 0.0  ;;  %779 = vadd.xlane.f32.xlu0 %v778_v31  ;;  %v1773_v56 = vpop.eup %1772 }
  0xe5   : > { %1776 = vpow2.f32 %v677_v24  ;;  %773 = vadd.xlane.f32.xlu1 %v772_v60  ;;  %v775_v24 = vsel %vm468_vm0, %v1773_v56, 0.0 }
  0xe6   : > { %767 = vadd.xlane.f32.xlu2 %v766_v18  ;;  %1778 = vpow2.f32 %v679_v62 }
  0xe7   : > { %v2384_v25 = vpop.xlane.xlu2 %575  ;;  %v2386_v54 = vpop.xlane.xlu1 %572 }
  0xe8   : > { %3543 = vst [vmem:[#allocation24_spill] sm:$0xff] %v2384_v25  ;;  %v615_v61 = vsub.f32 %v2204_v5, %v2384_v25  ;;  %v2390_v48 = vpop.xlane.xlu0 %569  ;;  %v614_v36 = vsub.f32 %v2207_v9, %v2386_v54 }
  0xe9   : > { %3544 = vst [vmem:[#allocation25_spill] sm:$0xff] %v2386_v54  ;;  %v613_v55 = vsub.f32 %v2210_v10, %v2390_v48  ;;  %v2480_v54 = vld [vmem:[%s2413_s28 + $0x48] sm:$0xff] }
  0xea   : > { %3545 = vst [vmem:[#allocation26_spill] sm:$0xff] %v2390_v48  ;;  %v1775_v50 = vpop.eup %1774  ;;  %v687_v49 = vmul.f32 1.442695, %v615_v61  ;;  %v685_v10 = vmul.f32 1.442695, %v614_v36 }
  0xeb   : > { %v1777_v43 = vpop.eup %1776  ;;  %v683_v30 = vmul.f32 1.442695, %v613_v55  ;;  %v787_v37 = vsel %vm468_vm0, %v1775_v50, 0.0 }
  0xec   : > { %1780 = vpow2.f32 %v687_v49  ;;  %v781_v5 = vsel %vm468_vm0, %v1777_v43, 0.0  ;;  %788 = vadd.xlane.f32.xlu0 %v787_v37  ;;  %v1779_v31 = vpop.eup %1778  ;;  %v2420_v37 = vld [vmem:[%s2413_s28 + $0x40] sm:$0xff] }
  0xed   : > { %1782 = vpow2.f32 %v683_v30  ;;  %782 = vadd.xlane.f32.xlu1 %v781_v5  ;;  %v784_v55 = vsel %vm468_vm0, %v1779_v31, 0.0  ;;  %v2416_v30 = vld [vmem:[%s2413_s28 + $0x8] sm:$0xff]  ;;  %v2431_v31 = vld [vmem:[%s2413_s28 + $0x10] sm:$0xff] }
  0xee   : > { %776 = vadd.xlane.f32.xlu2 %v775_v24  ;;  %1784 = vpow2.f32 %v685_v10  ;;  %v2428_v10 = vld [vmem:[%s2413_s28] sm:$0xff]  ;;  %vm358_vm14 = vcmp.ne.s32.totalorder %v2416_v30, 4294967295 }
  0xef   : > { %vm357_vm11 = vcmp.ne.s32.totalorder %v2428_v10, 4294967295 }
  0xf0   : > { %v2399_v18 = vpop.xlane.xlu0 %578 }
  0xf1   : > { %3546 = vst [vmem:[#allocation27_spill] sm:$0xff] %v2399_v18  ;;  %v616_v9 = vsub.f32 %v2219_v17, %v2399_v18 }
  0xf2   : > { %v1781_v60 = vpop.eup %1780 }
  0xf3   : > { %v1783_v62 = vpop.eup %1782  ;;  %v689_v61 = vmul.f32 1.442695, %v616_v9  ;;  %v796_v56 = vsel %vm468_vm0, %v1781_v60, 0.0 }
  0xf4   : > { %v790_v50 = vsel %vm468_vm0, %v1783_v62, 0.0  ;;  %797 = vadd.xlane.f32.xlu0 %v796_v56  ;;  %v1785_v49 = vpop.eup %1784  ;;  %v2445_v56 = vld [vmem:[%s2413_s28 + $0x28] sm:$0xff] }
  0xf5   : > { %1786 = vpow2.f32 %v689_v61  ;;  %791 = vadd.xlane.f32.xlu1 %v790_v50  ;;  %v793_v43 = vsel %vm468_vm0, %v1785_v49, 0.0  ;;  %v2442_v61 = vld [vmem:[%s2413_s28 + $0x18] sm:$0xff] }
  0xf6   : > { %785 = vadd.xlane.f32.xlu2 %v784_v55 }
  0xfb   : > { %v1787_v36 = vpop.eup %1786 }
  0xfc   : > { %v799_v17 = vsel %vm468_vm0, %v1787_v36, 0.0  ;;  %v2456_v36 = vld [vmem:[%s2413_s28 + $0x20] sm:$0xff] }
  0xfd   : > { %800 = vadd.xlane.f32.xlu1 %v799_v17 }
  0xfe   : > { %794 = vadd.xlane.f32.xlu2 %v793_v43  ;;  %v2459_v43 = vld [vmem:[%s2413_s28 + $0x38] sm:$0xff] }
 0x108   : > { %919 = vperm.xlu0 %1712, %v2416_v30  }
 0x10f   : > { %v2422_v24 = vpop.xlane.xlu0 %698 }
 0x110   : > { %v2424_v5 = vpop.xlane.xlu1 %692  ;;  %940 = vperm.xlu0 %1712, %v2420_v37  }
 0x111   : > { %1788 = vlog2.f32 %v2424_v5 }
 0x116   : > { %916 = vperm.xlu2 %1711, %v2428_v10   ;;  %922 = vperm.xlu1 %1713, %v2431_v31  }
 0x117   : > { %v2435_v9 = vpop.xlane.xlu0 %707 }
 0x118   : > { %v2437_v60 = vpop.xlane.xlu1 %701 }
 0x119   : > { %v2439_v62 = vpop.xlane.xlu2 %695 }
 0x11a   : > { %1790 = vlog2.f32 %v2439_v62 }
 0x11b   : > { %1792 = vlog2.f32 %v2437_v60 }
 0x11c   : > { %1794 = vlog2.f32 %v2422_v24 }
 0x11e   : > { %925 = vperm.xlu2 %1711, %v2442_v61   ;;  %931 = vperm.xlu1 %1713, %v2445_v56  }
 0x11f   : > { %v2449_v55 = vpop.xlane.xlu0 %716 }
 0x120   : > { %v2453_v49 = vpop.xlane.xlu1 %710 }
 0x121   : > { %v2451_v50 = vpop.xlane.xlu2 %704 }
 0x122   : > { %1796 = vlog2.f32 %v2451_v50 }
 0x123   : > { %1798 = vlog2.f32 %v2453_v49 }
 0x124   : > { %1800 = vlog2.f32 %v2435_v9 }
 0x125   : > { %1802 = vlog2.f32 %v2449_v55 }
 0x126   : > { %928 = vperm.xlu2 %1711, %v2456_v36   ;;  %937 = vperm.xlu1 %1713, %v2459_v43  }
 0x127   : > { %v2463_v17 = vpop.xlane.xlu0 %725 }
 0x128   : > { %v2467_v48 = vpop.xlane.xlu1 %719 }
 0x129   : > { %v2465_v18 = vpop.xlane.xlu2 %713 }
 0x12a   : > { %1804 = vlog2.f32 %v2465_v18 }
 0x12b   : > { %1806 = vlog2.f32 %v2467_v48 }
 0x12e   : > { %934 = vperm.xlu2 %1711, %v2470_v42   ;;  %946 = vperm.xlu1 %1713, %v2494_v3  }
 0x12f   : > { %v2473_v44 = vpop.xlane.xlu0 %734 }
 0x130   : > { %v2477_v15 = vpop.xlane.xlu1 %728 }
 0x131   : > { %v2475_v25 = vpop.xlane.xlu2 %722 }
 0x132   : > { %1808 = vlog2.f32 %v2475_v25 }
 0x133   : > { %1810 = vlog2.f32 %v2477_v15 }
 0x136   : > { %943 = vperm.xlu2 %1711, %v2480_v54  }
 0x137   : > { %v2483_v51 = vpop.xlane.xlu0 %743 }
 0x138   : > { %3547 = vst [vmem:[#allocation28_spill] sm:$0xff] %v2483_v51  ;;  %v2487_v59 = vpop.xlane.xlu1 %737 }
 0x139   : > { %v2485_v19 = vpop.xlane.xlu2 %731  ;;  %1812 = vlog2.f32 %v2487_v59 }
 0x13a   : > { %1814 = vlog2.f32 %v2463_v17 }
 0x13b   : > { %1816 = vlog2.f32 %v2485_v19 }
 0x13c   : > { %1818 = vlog2.f32 %v2473_v44  ;;  %v3608_v44 = vld [vmem:[#allocation6_spill] sm:$0xff] }
 0x13f   : > { %v2491_v38 = vpop.xlane.xlu0 %752 }
 0x140   : > { %3549 = vst [vmem:[#allocation30_spill] sm:$0xff] %v2491_v38  ;;  %v2497_v32 = vpop.xlane.xlu1 %746 }
 0x141   : > { %v2489_v58 = vpop.xlane.xlu2 %740  ;;  %3550 = vst [vmem:[#allocation31_spill] sm:$0xff] %v2497_v32 }
 0x142   : > { %3548 = vst [vmem:[#allocation29_spill] sm:$0xff] %v2489_v58  ;;  %v1789_v58 = vpop.eup %1788 }
 0x143   : > { %v1791_v62 = vpop.eup %1790 }
 0x144   : > { %v805_v60 = vmul.f32 0.6931472, %v1791_v62 }
 0x147   : > { %v2501_v26 = vpop.xlane.xlu0 %761 }
 0x148   : > { %3552 = vst [vmem:[#allocation33_spill] sm:$0xff] %v2501_v26  ;;  %v2503_v27 = vpop.xlane.xlu1 %755 }
 0x149   : > { %v2499_v21 = vpop.xlane.xlu2 %749  ;;  %3553 = vst [vmem:[#allocation34_spill] sm:$0xff] %v2503_v27 }
 0x14a   : > { %3551 = vst [vmem:[#allocation32_spill] sm:$0xff] %v2499_v21 }
 0x14f   : > { %v2507_v34 = vpop.xlane.xlu0 %770 }
 0x150   : > { %3555 = vst [vmem:[#allocation36_spill] sm:$0xff] %v2507_v34  ;;  %v2509_v40 = vpop.xlane.xlu1 %764 }
 0x151   : > { %v2505_v29 = vpop.xlane.xlu2 %758  ;;  %3556 = vst [vmem:[#allocation37_spill] sm:$0xff] %v2509_v40 }
 0x152   : > { %3554 = vst [vmem:[#allocation35_spill] sm:$0xff] %v2505_v29  ;;  %v3516_v29 = vlaneseq }
 0x154   : > { %v2530_v40 = vand.u32 127, %v3516_v29 }
 0x157   : > { %v2513_v46 = vpop.xlane.xlu0 %779 }
 0x158   : > { %3558 = vst [vmem:[#allocation39_spill] sm:$0xff] %v2513_v46  ;;  %v2517_v51 = vpop.xlane.xlu1 %773 }
 0x159   : > { %v2511_v33 = vpop.xlane.xlu2 %767  ;;  %3560 = vst [vmem:[#allocation41_spill] sm:$0xff] %v2517_v51 }
 0x15a   : > { %3557 = vst [vmem:[#allocation38_spill] sm:$0xff] %v2511_v33 }
 0x15f   : > { %v2519_v32 = vpop.xlane.xlu0 %788 }
 0x160   : > { %3561 = vst [vmem:[#allocation42_spill] sm:$0xff] %v2519_v32  ;;  %v2523_v26 = vpop.xlane.xlu1 %782 }
 0x161   : > { %v2515_v38 = vpop.xlane.xlu2 %776  ;;  %3563 = vst [vmem:[#allocation44_spill] sm:$0xff] %v2523_v26 }
 0x162   : > { %3559 = vst [vmem:[#allocation40_spill] sm:$0xff] %v2515_v38  ;;  %v273_v38 = vld [vmem:[%s2413_s28 + $0xf0] sm:$0xff] }
 0x167   : > { %v2527_v34 = vpop.xlane.xlu0 %797 }
 0x168   : > { %3565 = vst [vmem:[#allocation46_spill] sm:$0xff] %v2527_v34  ;;  %v2532_v33 = vpop.xlane.xlu1 %791 }
 0x169   : > { %v2521_v21 = vpop.xlane.xlu2 %785  ;;  %3566 = vst [vmem:[#allocation47_spill] sm:$0xff] %v2532_v33 }
 0x16a   : > { %3562 = vst [vmem:[#allocation43_spill] sm:$0xff] %v2521_v21 }
 0x170   : > { %v2540_v29 = vpop.xlane.xlu1 %800 }
 0x171   : > { %v2525_v27 = vpop.xlane.xlu2 %794  ;;  %3567 = vst [vmem:[#allocation48_spill] sm:$0xff] %v2540_v29 }
 0x172   : > { %3564 = vst [vmem:[#allocation45_spill] sm:$0xff] %v2525_v27 }
 0x179   : > { %v917_v46 = vpop.permute.xlu2 %916 }
 0x17a   : > { %vm1026_vm1 = vcmp.eq.s32.totalorder %v2530_v40, %v917_v46  ;;  %v920_v51 = vpop.permute.xlu0 %919 }
 0x17b   : > { %v1063_v32 = vsel %vm1026_vm1, %v2045_v2, 0.0  ;;  %vm1027_vm2 = vcmp.eq.s32.totalorder %v2530_v40, %v920_v51 }
 0x17c   : > { %v1100_v26 = vsel %vm468_vm0, %v1063_v32, 0.0  ;;  %v1064_v27 = vsel %vm1027_vm2, %v2060_v8, 0.0 }
 0x17d   : > { %1101 = vadd.xlane.f32.xlu0 %v1100_v26  ;;  %v1103_v34 = vsel %vm468_vm0, %v1064_v27, 0.0 }
 0x17e   : > { %1104 = vadd.xlane.f32.xlu2 %v1103_v34 }
 0x181   : > { %v926_v21 = vpop.permute.xlu2 %925 }
 0x182   : > { %vm1029_vm3 = vcmp.eq.s32.totalorder %v2530_v40, %v926_v21 }
 0x183   : > { %v1066_v46 = vsel %vm1029_vm3, %v2057_v7, 0.0  ;;  %v941_v7 = vpop.permute.xlu0 %940  ;;  %vm360_vm3 = vcmp.ne.s32.totalorder %v2442_v61, 4294967295 }
 0x184   : > { %v1109_v33 = vsel %vm468_vm0, %v1066_v46, 0.0  ;;  %vm1034_vm8 = vcmp.eq.s32.totalorder %v2530_v40, %v941_v7  ;;  %v2583_v7 = vld [vmem:[%s2413_s28 + $0x88] sm:$0xff] }
 0x185   : > { %1110 = vadd.xlane.f32.xlu0 %v1109_v33 }
 0x188   : > { %v923_v51 = vpop.permute.xlu1 %922 }
 0x189   : > { %v929_v2 = vpop.permute.xlu2 %928  ;;  %vm1028_vm4 = vcmp.eq.s32.totalorder %v2530_v40, %v923_v51 }
 0x18a   : > { %v1065_v26 = vsel %vm1028_vm4, %v2042_v1, 0.0  ;;  %vm1030_vm5 = vcmp.eq.s32.totalorder %v2530_v40, %v929_v2 }
 0x18b   : > { %v1106_v8 = vsel %vm468_vm0, %v1065_v26, 0.0  ;;  %v1067_v21 = vsel %vm1030_vm5, %v2039_v0, 0.0  ;;  %vm359_vm5 = vcmp.ne.s32.totalorder %v2431_v31, 4294967295 }
 0x18c   : > { %1107 = vadd.xlane.f32.xlu1 %v1106_v8  ;;  %v1112_v46 = vsel %vm468_vm0, %v1067_v21, 0.0  ;;  %v2579_v21 = vld [vmem:[%s2413_s28 + $0x78] sm:$0xff] }
 0x190   : > { %v932_v27 = vpop.permute.xlu1 %931 }
 0x191   : > { %v935_v34 = vpop.permute.xlu2 %934  ;;  %vm1031_vm7 = vcmp.eq.s32.totalorder %v2530_v40, %v932_v27 }
 0x192   : > { %vm1032_vm6 = vcmp.eq.s32.totalorder %v2530_v40, %v935_v34  ;;  %v1068_v32 = vsel %vm1031_vm7, %v2054_v6, 0.0 }
 0x193   : > { %v1069_v33 = vsel %vm1032_vm6, %v2075_v14, 0.0  ;;  %v1115_v51 = vsel %vm468_vm0, %v1068_v32, 0.0  ;;  %v1071_v14 = vsel %vm1034_vm8, %v2069_v12, 0.0  ;;  %v2567_v12 = vld [vmem:[%s2413_s28 + $0x58] sm:$0xff]  ;;  %v2591_v32 = vld [vmem:[%s2413_s28 + $0xa0] sm:$0xff] }
 0x194   : > { %v1118_v1 = vsel %vm468_vm0, %v1069_v33, 0.0  ;;  %1113 = vadd.xlane.f32.xlu1 %v1112_v46  ;;  %1116 = vadd.xlane.f32.xlu2 %v1115_v51  ;;  %v1124_v27 = vsel %vm468_vm0, %v1071_v14, 0.0  ;;  %v2587_v33 = vld [vmem:[%s2413_s28 + $0x90] sm:$0xff]  ;;  %3569 = vst [vmem:[#allocation50_spill] sm:$0xff] %v2591_v32  ;;  %v264_v51 = vld [vmem:[%s2413_s28 + $0xa8] sm:$0xff] }
 0x195   : > { %1119 = vadd.xlane.f32.xlu0 %v1118_v1  ;;  %3568 = vst [vmem:[#allocation49_spill] sm:$0xff] %v2587_v33  ;;  %v3570_v1 = vlaneseq }
 0x197   : > { %v2596_v46 = vshrl.u32 %v3570_v1, 7  ;;  %v270_v1 = vld [vmem:[%s2413_s28 + $0xd8] sm:$0xff] }
 0x198   : > { %v938_v2 = vpop.permute.xlu1 %937 }
 0x199   : > { %v944_v0 = vpop.permute.xlu2 %943  ;;  %vm1033_vm10 = vcmp.eq.s32.totalorder %v2530_v40, %v938_v2  ;;  %v2600_v2 = vstv %s280_s29  ;;  %v285_v30 = vadd.s32 24, %v2596_v46  ;;  %v288_v5 = vadd.s32 48, %v2596_v46 }
 0x19a   : > { %vm1035_vm9 = vcmp.eq.s32.totalorder %v2530_v40, %v944_v0  ;;  %v1070_v6 = vsel %vm1033_vm10, %v2072_v13, 0.0  ;;  %v2571_v13 = vld [vmem:[%s2413_s28 + $0x60] sm:$0xff]  ;;  %v268_v0 = vld [vmem:[%s2413_s28 + $0xc8] sm:$0xff]  ;;  %v320_v14 = vadd.s32 %v2600_v2, %v2596_v46  ;;  %vm362_vm10 = vcmp.ne.s32.totalorder %v2445_v56, 4294967295 }
 0x19b   : > { %v1072_v26 = vsel %vm1035_vm9, %v2090_v20, 0.0  ;;  %v1121_v8 = vsel %vm468_vm0, %v1070_v6, 0.0  ;;  %v2575_v20 = vld [vmem:[%s2413_s28 + $0x70] sm:$0xff]  ;;  %v283_v6 = vadd.s32 8, %v2596_v46  ;;  %vm361_vm9 = vcmp.ne.s32.totalorder %v2456_v36, 4294967295 }
 0x19c   : > { %v1127_v34 = vsel %vm468_vm0, %v1072_v26, 0.0  ;;  %1122 = vadd.xlane.f32.xlu1 %v1121_v8  ;;  %vm394_vm12 = vcmp.lt.s32.totalorder %v320_v14, 300  ;;  %v267_v8 = vld [vmem:[%s2413_s28 + $0xc0] sm:$0xff]  ;;  %v277_v36 = vld [vmem:[%s2413_s28 + $0x110] sm:$0xff]  ;;  %v297_v15 = vadd.s32 120, %v2596_v46 }
 0x19d   : > { %1125 = vadd.xlane.f32.xlu0 %v1124_v27  ;;  %1128 = vadd.xlane.f32.xlu2 %v1127_v34  ;;  %vm2606_vm13 = vmand %vm357_vm11, %vm394_vm12  ;;  %v3518_v34 = vmov 0.0   ;;  %v321_v27 = vadd.s32 %v2600_v2, %v283_v6  ;;  %v323_v6 = vadd.s32 %v2600_v2, %v285_v30  ;;  %v3577_v30 = vmov 0.0  }
 0x19e   : > { %v1625_v10 = vsel %vm2606_vm13, 1.0, %v3518_v34  ;;  %v335_v59 = vadd.s32 %v2600_v2, %v297_v15 }
 0x19f   : > { %vm395_vm1 = vcmp.lt.s32.totalorder %v321_v27, 300  ;;  %v272_v27 = vld [vmem:[%s2413_s28 + $0xe8] sm:$0xff]  ;;  %vm397_vm4 = vcmp.lt.s32.totalorder %v323_v6, 300 }
 0x1a0   : > { %vm2618_vm2 = vmand %vm358_vm14, %vm395_vm1  ;;  %vm363_vm1 = vcmp.ne.s32.totalorder %v2470_v42, 4294967295 }
 0x1a1   : > { %v1626_v14 = vsel %vm2618_vm2, 1.0, %v3518_v34  ;;  %vm2634_vm6 = vmand %vm360_vm3, %vm397_vm4 }
 0x1a2   : > { %v1443_v29 = vsel %vm1285_vm15, %v1626_v14, 0.0 }
 0x1b1   : > { %949 = vperm.xlu0 %1712, %v2567_v12  }
 0x1b5   : > { %952 = vperm.xlu2 %1711, %v2571_v13  }
 0x1b9   : > { %958 = vperm.xlu0 %1712, %v2575_v20  }
 0x1bd   : > { %961 = vperm.xlu2 %1711, %v2579_v21  }
 0x1c1   : > { %967 = vperm.xlu0 %1712, %v2583_v7  }
 0x1c5   : > { %970 = vperm.xlu2 %1711, %v2587_v33   ;;  %v877_v33 = vadd.f32 %v805_v60, %v2241_v45  ;;  %v947_v60 = vpop.permute.xlu1 %946 }
 0x1c9   : > { %976 = vperm.xlu0 %1712, %v2591_v32  }
 0x1cd   : > { %979 = vperm.xlu2 %1711, %v264_v51   ;;  %v1442_v51 = vsel %vm1285_vm15, %v1625_v10, 0.0  ;;  %v284_v10 = vadd.s32 16, %v2596_v46 }
 0x1cf   : > { %v322_v32 = vadd.s32 %v2600_v2, %v284_v10 }
 0x1d1   : > { %991 = vperm.xlu0 %1712, %v268_v0   ;;  %vm396_vm7 = vcmp.lt.s32.totalorder %v322_v32, 300 }
 0x1d2   : > { %vm2641_vm8 = vmand %vm359_vm5, %vm396_vm7  ;;  %vm364_vm7 = vcmp.ne.s32.totalorder %v2459_v43, 4294967295 }
 0x1d3   : > { %v1627_v31 = vsel %vm2641_vm8, 1.0, %v3577_v30 }
 0x1d4   : > { %v1445_v14 = vsel %vm1285_vm15, %v1627_v31, 0.0  ;;  %v326_v31 = vadd.s32 %v2600_v2, %v288_v5  ;;  %v290_v5 = vadd.s32 64, %v2596_v46 }
 0x1d5   : > { %988 = vperm.xlu2 %1711, %v267_v8   ;;  %v1444_v8 = vadd.f32 %v1443_v29, %v1442_v51  ;;  %v1628_v29 = vsel %vm2634_vm6, 1.0, %v3577_v30 }
 0x1d6   : > { %v1447_v51 = vsel %vm1285_vm15, %v1628_v29, 0.0  ;;  %vm400_vm3 = vcmp.lt.s32.totalorder %v326_v31, 300  ;;  %v1793_v31 = vpop.eup %1792 }
 0x1d7   : > { %v1446_v6 = vadd.f32 %v1445_v14, %v1444_v8  ;;  %vm2680_vm5 = vmand %vm363_vm1, %vm400_vm3 }
 0x1d9   : > { %997 = vperm.xlu0 %1712, %v270_v1   ;;  %v276_v1 = vld [vmem:[%s2413_s28 + $0x108] sm:$0xff]  ;;  %v1448_v32 = vadd.f32 %v1447_v51, %v1446_v6 }
 0x1dd   : > { %1003 = vperm.xlu2 %1711, %v272_v27   ;;  %v287_v27 = vadd.s32 40, %v2596_v46 }
 0x1df   : > { %v325_v29 = vadd.s32 %v2600_v2, %v287_v27  ;;  %v289_v27 = vadd.s32 56, %v2596_v46 }
 0x1e1   : > { %1006 = vperm.xlu0 %1712, %v273_v38   ;;  %v286_v38 = vadd.s32 32, %v2596_v46  ;;  %vm399_vm14 = vcmp.lt.s32.totalorder %v325_v29, 300 }
 0x1e2   : > { %vm2672_vm4 = vmand %vm362_vm10, %vm399_vm14 }
 0x1e3   : > { %v324_v10 = vadd.s32 %v2600_v2, %v286_v38 }
 0x1e5   : > { %1015 = vperm.xlu2 %1711, %v276_v1   ;;  %vm398_vm11 = vcmp.lt.s32.totalorder %v324_v10, 300  ;;  %v803_v1 = vmul.f32 0.6931472, %v1789_v58  ;;  %v1630_v58 = vsel %vm2672_vm4, 1.0, %v3577_v30 }
 0x1e6   : > { %vm2662_vm12 = vmand %vm361_vm9, %vm398_vm11  ;;  %v1451_v42 = vsel %vm1285_vm15, %v1630_v58, 0.0  ;;  %vm365_vm9 = vcmp.ne.s32.totalorder %v2420_v37, 4294967295 }
 0x1e7   : > { %v1629_v51 = vsel %vm2662_vm12, 1.0, %v3577_v30  ;;  %v876_v10 = vadd.f32 %v803_v1, %v2229_v28 }
 0x1e8   : > { %v1449_v56 = vsel %vm1285_vm15, %v1629_v51, 0.0  ;;  %v327_v51 = vadd.s32 %v2600_v2, %v289_v27  ;;  %v1863_v27 = vld [vmem:[%s2036_s25 + $0x60] sm:$0xff] }
 0x1e9   : > { %v1450_v6 = vadd.f32 %v1449_v56, %v1448_v32  ;;  %v1631_v32 = vsel %vm2680_vm5, 1.0, %v3577_v30  ;;  %v328_v56 = vadd.s32 %v2600_v2, %v290_v5 }
 0x1ea   : > { %vm401_vm10 = vcmp.lt.s32.totalorder %v327_v51, 300 }
 0x1eb   : > { %v1452_v29 = vadd.f32 %v1451_v42, %v1450_v6  ;;  %vm402_vm11 = vcmp.lt.s32.totalorder %v328_v56, 300  ;;  %v809_v6 = vmul.f32 0.6931472, %v1793_v31  ;;  %vm2702_vm14 = vmand %vm364_vm7, %vm401_vm10  ;;  %vm368_vm10 = vcmp.ne.s32.totalorder %v2567_v12, 4294967295 }
 0x1ec   : > { %v1632_v45 = vsel %vm2702_vm14, 1.0, %v3577_v30  ;;  %vm2712_vm1 = vmand %vm365_vm9, %vm402_vm11 }
 0x1ed   : > { %1018 = vperm.xlu2 %1711, %v277_v36   ;;  %v1453_v36 = vsel %vm1285_vm15, %v1631_v32, 0.0  ;;  %v1455_v24 = vsel %vm1285_vm15, %v1632_v45, 0.0  ;;  %v879_v0 = vadd.f32 %v809_v6, %v2235_v39 }
 0x1ee   : > { %v1454_v28 = vadd.f32 %v1453_v36, %v1452_v29 }
 0x1f0   : > { %v1102_v62 = vpop.xlane.xlu0 %1101  ;;  %v1456_v5 = vadd.f32 %v1455_v24, %v1454_v28 }
 0x1f1   : > { %v1211_v58 = vsub.f32 %v876_v10, %v1102_v62  ;;  %v1105_v1 = vpop.xlane.xlu2 %1104  ;;  %v1633_v10 = vsel %vm2712_vm1, 1.0, %v3577_v30  ;;  %v1795_v62 = vpop.eup %1794 }
 0x1f2   : > { %v1212_v32 = vsub.f32 %v877_v33, %v1105_v1  ;;  %v1457_v31 = vsel %vm1285_vm15, %v1633_v10, 0.0  ;;  %v1797_v28 = vpop.eup %1796 }
 0x1f3   : > { %v1248_v42 = vsel %vm2606_vm13, %v1211_v58, 0.0  ;;  %v2723_v51 = vadd.f32 %v1457_v31, %v1456_v5  ;;  %v1799_v1 = vpop.eup %1798  ;;  %vm1036_vm13 = vcmp.eq.s32.totalorder %v2530_v40, %v947_v60  ;;  %v811_v50 = vmul.f32 0.6931472, %v1797_v28 }
 0x1f4   : > { %v1249_v37 = vsel %vm2618_vm2, %v1212_v32, 0.0  ;;  %v1286_v33 = vsel %vm1285_vm15, %v1248_v42, 0.0  ;;  %v1801_v42 = vpop.eup %1800  ;;  %v815_v49 = vmul.f32 0.6931472, %v1799_v1  ;;  %vm366_vm2 = vcmp.ne.s32.totalorder %v2480_v54, 4294967295 }
 0x1f5   : > { %v1287_v43 = vsel %vm1285_vm15, %v1249_v37, 0.0  ;;  %1021 = vperm.xlu2 %1711, %v278_v47   ;;  %v807_v47 = vmul.f32 0.6931472, %v1795_v62  ;;  %v813_v34 = vmul.f32 0.6931472, %v1801_v42  ;;  %v1862_v37 = vld [vmem:[%s2036_s25 + $0x50] sm:$0xff]  ;;  %v1803_v18 = vpop.eup %1802 }
 0x1f6   : > { %v1288_v29 = vadd.f32 %v1287_v43, %v1286_v33  ;;  %v1073_v24 = vsel %vm1036_vm13, %v1862_v37, 0.0  ;;  %v291_v33 = vadd.s32 72, %v2596_v46  ;;  %v880_v43 = vadd.f32 %v811_v50, %v2223_v22  ;;  %v1805_v48 = vpop.eup %1804  ;;  %v2832_v37 = vld [vmem:[%s2413_s28 + $0xd0] sm:$0xff] }
 0x1f7   : > { %v878_v39 = vadd.f32 %v807_v47, %v2225_v23  ;;  %v882_v5 = vadd.f32 %v815_v49, %v2255_v16  ;;  %v881_v61 = vadd.f32 %v813_v34, %v2233_v35  ;;  %v1130_v31 = vsel %vm468_vm0, %v1073_v24, 0.0 }
 0x1f8   : > { %v1111_v36 = vpop.xlane.xlu0 %1110  ;;  %v819_v28 = vmul.f32 0.6931472, %v1803_v18 }
 0x1f9   : > { %v1214_v56 = vsub.f32 %v879_v0, %v1111_v36 }
 0x1fa   : > { %v884_v49 = vadd.f32 %v819_v28, %v2249_v4  ;;  %v2784_v28 = vld [vmem:[%s2413_s28 + $0x68] sm:$0xff] }
 0x1fb   : > { %v1251_v58 = vsel %vm2634_vm6, %v1214_v56, 0.0 }
 0x1fc   : > { %v1291_v55 = vsel %vm1285_vm15, %v1251_v58, 0.0  ;;  %v329_v58 = vadd.s32 %v2600_v2, %v291_v33 }
 0x1fe   : > { %vm403_vm6 = vcmp.lt.s32.totalorder %v329_v58, 300 }
 0x1ff   : > { %v1108_v6 = vpop.xlane.xlu1 %1107 }
 0x200   : > { %v1213_v32 = vsub.f32 %v878_v39, %v1108_v6  ;;  %v817_v39 = vmul.f32 0.6931472, %v1805_v48 }
 0x202   : > { %v1250_v9 = vsel %vm2641_vm8, %v1213_v32, 0.0  ;;  %v883_v8 = vadd.f32 %v817_v39, %v2251_v11  ;;  %vm2759_vm8 = vmand %vm366_vm2, %vm403_vm6  ;;  %vm372_vm6 = vcmp.ne.s32.totalorder %v2579_v21, 4294967295 }
 0x203   : > { %v1289_v23 = vsel %vm1285_vm15, %v1250_v9, 0.0 }
 0x204   : > { %v1290_v45 = vadd.f32 %v1289_v23, %v1288_v29  ;;  %v1807_v29 = vpop.eup %1806 }
 0x205   : > { %v821_v35 = vmul.f32 0.6931472, %v1807_v29  ;;  %v1864_v29 = vld [vmem:[%s2036_s25 + $0x78] sm:$0xff] }
 0x206   : > { %v1292_v60 = vadd.f32 %v1291_v55, %v1290_v45 }
 0x207   : > { %v1114_v10 = vpop.xlane.xlu1 %1113  ;;  %v1117_v36 = vpop.xlane.xlu2 %1116  ;;  %v885_v34 = vadd.f32 %v821_v35, %v2270_v63 }
 0x208   : > { %v1120_v0 = vpop.xlane.xlu0 %1119  ;;  %v1215_v62 = vsub.f32 %v880_v43, %v1114_v10  ;;  %v1216_v47 = vsub.f32 %v881_v61, %v1117_v36 }
 0x209   : > { %v1217_v56 = vsub.f32 %v882_v5, %v1120_v0 }
 0x20a   : > { %v1252_v22 = vsel %vm2662_vm12, %v1215_v62, 0.0  ;;  %v1253_v6 = vsel %vm2672_vm4, %v1216_v47, 0.0 }
 0x20b   : > { %v1254_v16 = vsel %vm2680_vm5, %v1217_v56, 0.0  ;;  %1131 = vadd.xlane.f32.xlu0 %v1130_v31  ;;  %v1293_v1 = vsel %vm1285_vm15, %v1252_v22, 0.0  ;;  %v1295_v32 = vsel %vm1285_vm15, %v1253_v6, 0.0  ;;  %v1865_v56 = vld [vmem:[%s2036_s25 + $0x58] sm:$0xff]  ;;  %v2790_v22 = vld [vmem:[%s2413_s28 + $0x80] sm:$0xff]  ;;  %vm367_vm5 = vcmp.ne.s32.totalorder %v2494_v3, 4294967295 }
 0x20c   : > { %v1294_v42 = vadd.f32 %v1293_v1, %v1292_v60  ;;  %v1297_v38 = vsel %vm1285_vm15, %v1254_v16, 0.0  ;;  %v2794_v16 = vld [vmem:[%s2413_s28 + $0x98] sm:$0xff]  ;;  %v1634_v1 = vsel %vm2759_vm8, 1.0, %v3577_v30 }
 0x20e   : > { %v1296_v50 = vadd.f32 %v1295_v32, %v1294_v42  ;;  %v1459_v42 = vsel %vm1285_vm15, %v1634_v1, 0.0  ;;  %v2806_v32 = vld [vmem:[%s2413_s28 + $0xb0] sm:$0xff] }
 0x20f   : > { %v1123_v9 = vpop.xlane.xlu1 %1122 }
 0x210   : > { %v1126_v23 = vpop.xlane.xlu0 %1125  ;;  %v1298_v45 = vadd.f32 %v1297_v38, %v1296_v50  ;;  %v1218_v14 = vsub.f32 %v883_v8, %v1123_v9  ;;  %v1129_v54 = vpop.xlane.xlu2 %1128  ;;  %v292_v8 = vadd.s32 80, %v2596_v46  ;;  %v2816_v9 = vld [vmem:[%s2413_s28 + $0xb8] sm:$0xff] }
 0x211   : > { %v1219_v24 = vsub.f32 %v884_v49, %v1126_v23  ;;  %v1220_v55 = vsub.f32 %v885_v34, %v1129_v54  ;;  %v1460_v49 = vadd.f32 %v1459_v42, %v2723_v51 }
 0x212   : > { %v1255_v11 = vsel %vm2702_vm14, %v1218_v14, 0.0  ;;  %v330_v38 = vadd.s32 %v2600_v2, %v292_v8 }
 0x213   : > { %v1256_v4 = vsel %vm2712_vm1, %v1219_v24, 0.0  ;;  %v1299_v33 = vsel %vm1285_vm15, %v1255_v11, 0.0  ;;  %v1257_v63 = vsel %vm2759_vm8, %v1220_v55, 0.0  ;;  %v2840_v55 = vld [vmem:[%s2413_s28 + $0xe0] sm:$0xff]  ;;  %vm369_vm1 = vcmp.ne.s32.totalorder %v2571_v13, 4294967295 }
 0x214   : > { %v1300_v18 = vadd.f32 %v1299_v33, %v1298_v45  ;;  %v1301_v43 = vsel %vm1285_vm15, %v1256_v4, 0.0  ;;  %v1303_v5 = vsel %vm1285_vm15, %v1257_v63, 0.0  ;;  %vm404_vm7 = vcmp.lt.s32.totalorder %v330_v38, 300  ;;  %v2847_v4 = vld [vmem:[%s2413_s28 + $0xf8] sm:$0xff]  ;;  %v1809_v33 = vpop.eup %1808 }
 0x215   : > { %vm2818_vm9 = vmand %vm367_vm5, %vm404_vm7  ;;  %vm409_vm8 = vcmp.lt.s32.totalorder %v335_v59, 300 }
 0x216   : > { %v1302_v60 = vadd.f32 %v1301_v43, %v1300_v18  ;;  %v1635_v45 = vsel %vm2818_vm9, 1.0, %v3577_v30  ;;  %v293_v18 = vadd.s32 88, %v2596_v46  ;;  %v823_v43 = vmul.f32 0.6931472, %v1809_v33 }
 0x217   : > { %v1461_v51 = vsel %vm1285_vm15, %v1635_v45, 0.0 }
 0x218   : > { %v953_v48 = vpop.permute.xlu2 %952  ;;  %v2772_v10 = vadd.f32 %v1303_v5, %v1302_v60  ;;  %v1462_v3 = vadd.f32 %v1461_v51, %v1460_v49  ;;  %v331_v60 = vadd.s32 %v2600_v2, %v293_v18  ;;  %v886_v5 = vadd.f32 %v823_v43, %v2266_v57 }
 0x219   : > { %vm1038_vm12 = vcmp.eq.s32.totalorder %v2530_v40, %v953_v48  ;;  %v2859_v48 = vld [vmem:[%s2413_s28 + $0x100] sm:$0xff] }
 0x21a   : > { %v1075_v26 = vsel %vm1038_vm12, %v1863_v27, 0.0  ;;  %vm405_vm11 = vcmp.lt.s32.totalorder %v331_v60, 300  ;;  %vm2901_vm12 = vmand %vm372_vm6, %vm409_vm8 }
 0x21b   : > { %v1136_v61 = vsel %vm468_vm0, %v1075_v26, 0.0  ;;  %vm2861_vm14 = vmand %vm368_vm10, %vm405_vm11 }
 0x21c   : > { %1137 = vadd.xlane.f32.xlu0 %v1136_v61  ;;  %v1636_v61 = vsel %vm2861_vm14, 1.0, %v3577_v30 }
 0x220   : > { %v962_v0 = vpop.permute.xlu2 %961 }
 0x221   : > { %vm1041_vm3 = vcmp.eq.s32.totalorder %v2530_v40, %v962_v0  ;;  %v1463_v0 = vsel %vm1285_vm15, %v1636_v61, 0.0 }
 0x222   : > { %v1078_v62 = vsel %vm1041_vm3, %v1864_v29, 0.0 }
 0x223   : > { %v950_v31 = vpop.permute.xlu0 %949  ;;  %v1145_v36 = vsel %vm468_vm0, %v1078_v62, 0.0 }
 0x224   : > { %vm1037_vm4 = vcmp.eq.s32.totalorder %v2530_v40, %v950_v31  ;;  %1146 = vadd.xlane.f32.xlu2 %v1145_v36  ;;  %v2870_v31 = vadd.f32 %v1463_v0, %v1462_v3  ;;  %v2878_v36 = vld [vmem:[%s2413_s28 + $0x120] sm:$0xff] }
 0x225   : > { %v1074_v47 = vsel %vm1037_vm4, %v1865_v56, 0.0  ;;  %v294_v56 = vadd.s32 96, %v2596_v46 }
 0x226   : > { %v1133_v58 = vsel %vm468_vm0, %v1074_v47, 0.0 }
 0x227   : > { %1134 = vadd.xlane.f32.xlu1 %v1133_v58  ;;  %v1811_v58 = vpop.eup %1810  ;;  %v332_v1 = vadd.s32 %v2600_v2, %v294_v56 }
 0x228   : > { %v2802_v6 = vpop.permute.xlu2 %970  ;;  %v827_v42 = vmul.f32 0.6931472, %v1811_v58  ;;  %v1813_v8 = vpop.eup %1812 }
 0x229   : > { %vm406_vm13 = vcmp.lt.s32.totalorder %v332_v1, 300  ;;  %v1815_v51 = vpop.eup %1814  ;;  %v833_v17 = vmul.f32 0.6931472, %v1813_v8  ;;  %v1867_v1 = vld [vmem:[%s2036_s25 + $0x70] sm:$0xff]  ;;  %vm1044_vm11 = vcmp.eq.s32.totalorder %v2530_v40, %v2802_v6 }
 0x22a   : > { %vm2892_vm2 = vmand %vm369_vm1, %vm406_vm13  ;;  %v825_v3 = vmul.f32 0.6931472, %v1815_v51 }
 0x22b   : > { %v2787_v39 = vpop.permute.xlu0 %958 }
 0x22c   : > { %v887_v60 = vadd.f32 %v825_v3, %v2264_v53  ;;  %v1866_v53 = vld [vmem:[%s2036_s25 + $0x68] sm:$0xff]  ;;  %vm1040_vm4 = vcmp.eq.s32.totalorder %v2530_v40, %v2787_v39  ;;  %v1871_v3 = vld [vmem:[%s2036_s25 + $0xb0] sm:$0xff] }
 0x230   : > { %v2822_v23 = vpop.permute.xlu2 %979 }
 0x231   : > { %vm1047_vm8 = vcmp.eq.s32.totalorder %v2530_v40, %v2822_v23 }
 0x233   : > { %v2796_v35 = vpop.permute.xlu0 %967 }
 0x238   : > { %v2834_v54 = vpop.permute.xlu2 %988 }
 0x23b   : > { %v2808_v50 = vpop.permute.xlu0 %976 }
 0x23c   : > { %vm1046_vm1 = vcmp.eq.s32.totalorder %v2530_v40, %v2808_v50 }
 0x240   : > { %955 = vperm.xlu1 %1713, %v2784_v28   ;;  %v2844_v11 = vpop.permute.xlu2 %1003 }
 0x241   : > { %vm1055_vm6 = vcmp.eq.s32.totalorder %v2530_v40, %v2844_v11 }
 0x243   : > { %v2829_v14 = vpop.permute.xlu0 %991 }
 0x248   : > { %964 = vperm.xlu1 %1713, %v2790_v22   ;;  %v2855_v25 = vpop.permute.xlu2 %1015 }
 0x24b   : > { %v2837_v24 = vpop.permute.xlu0 %997 }
 0x250   : > { %973 = vperm.xlu1 %1713, %v2794_v16   ;;  %v2881_v47 = vpop.permute.xlu2 %1018 }
 0x253   : > { %v2849_v63 = vpop.permute.xlu0 %1006 }
 0x258   : > { %982 = vperm.xlu1 %1713, %v2806_v32   ;;  %v2890_v49 = vpop.permute.xlu2 %1021 }
 0x260   : > { %985 = vperm.xlu1 %1713, %v2816_v9  }
 0x268   : > { %994 = vperm.xlu1 %1713, %v2832_v37  }
 0x270   : > { %1000 = vperm.xlu1 %1713, %v2840_v55  }
 0x278   : > { %1009 = vperm.xlu1 %1713, %v2847_v4  }
 0x27e   : > { %v1132_v26 = vpop.xlane.xlu0 %1131 }
 0x27f   : > { %v1221_v12 = vsub.f32 %v886_v5, %v1132_v26 }
 0x280   : > { %1012 = vperm.xlu1 %1713, %v2859_v48  }
 0x281   : > { %v1258_v57 = vsel %vm2818_vm9, %v1221_v12, 0.0  ;;  %vm1043_vm9 = vcmp.eq.s32.totalorder %v2530_v40, %v2796_v35 }
 0x282   : > { %v1305_v29 = vsel %vm1285_vm15, %v1258_v57, 0.0 }
 0x283   : > { %v1306_v62 = vadd.f32 %v1305_v29, %v2772_v10  ;;  %v888_v10 = vadd.f32 %v827_v42, %v2285_v52  ;;  %v891_v52 = vadd.f32 %v833_v17, %v2300_v41  ;;  %v1870_v17 = vld [vmem:[%s2036_s25 + $0x88] sm:$0xff] }
 0x288   : > { %1024 = vperm.xlu1 %1713, %v2878_v36  }
 0x28f   : > { %v1138_v34 = vpop.xlane.xlu0 %1137 }
 0x290   : > { %v1223_v45 = vsub.f32 %v888_v10, %v1138_v34  ;;  %v1868_v10 = vld [vmem:[%s2036_s25 + $0x80] sm:$0xff]  ;;  %v1869_v34 = vld [vmem:[%s2036_s25 + $0x98] sm:$0xff] }
 0x292   : > { %v1260_v13 = vsel %vm2892_vm2, %v1223_v45, 0.0 }
 0x293   : > { %v1309_v0 = vsel %vm1285_vm15, %v1260_v13, 0.0  ;;  %v1080_v13 = vsel %vm1043_vm9, %v1870_v17, 0.0  ;;  %vm1051_vm9 = vcmp.eq.s32.totalorder %v2530_v40, %v2829_v14 }
 0x297   : > { %v1147_v18 = vpop.xlane.xlu2 %1146 }
 0x298   : > { %v1226_v43 = vsub.f32 %v891_v52, %v1147_v18 }
 0x29a   : > { %v1135_v5 = vpop.xlane.xlu1 %1134  ;;  %v2908_v26 = vsel %vm2901_vm12, %v1226_v43, 0.0  ;;  %v1151_v43 = vsel %vm468_vm0, %v1080_v13, 0.0 }
 0x29b   : > { %v1222_v61 = vsub.f32 %v887_v60, %v1135_v5  ;;  %v1872_v60 = vld [vmem:[%s2036_s25 + $0xc0] sm:$0xff] }
 0x29d   : > { %v1259_v21 = vsel %vm2861_vm14, %v1222_v61, 0.0  ;;  %vm1050_vm14 = vcmp.eq.s32.totalorder %v2530_v40, %v2834_v54  ;;  %v1873_v61 = vld [vmem:[%s2036_s25 + $0x90] sm:$0xff] }
 0x29e   : > { %v1307_v41 = vsel %vm1285_vm15, %v1259_v21, 0.0  ;;  %v1087_v5 = vsel %vm1050_vm14, %v1872_v60, 0.0  ;;  %v1081_v21 = vsel %vm1044_vm11, %v1873_v61, 0.0  ;;  %v1875_v54 = vld [vmem:[%s2036_s25 + $0xd0] sm:$0xff]  ;;  %v1883_v61 = vld [vmem:[%s2036_s25 + $0x100] sm:$0xff]  ;;  %vm1053_vm11 = vcmp.eq.s32.totalorder %v2530_v40, %v2837_v24 }
 0x29f   : > { %v1308_v12 = vadd.f32 %v1307_v41, %v1306_v62  ;;  %v1077_v62 = vsel %vm1040_vm4, %v1867_v1, 0.0  ;;  %v1172_v41 = vsel %vm468_vm0, %v1087_v5, 0.0  ;;  %vm370_vm14 = vcmp.ne.s32.totalorder %v2784_v28, 4294967295 }
 0x2a0   : > { %v1142_v42 = vsel %vm468_vm0, %v1077_v62, 0.0  ;;  %v1877_v62 = vld [vmem:[%s2036_s25 + $0xa8] sm:$0xff] }
 0x2a1   : > { %v2914_v57 = vadd.f32 %v1309_v0, %v1308_v12  ;;  %v1154_v12 = vsel %vm468_vm0, %v1081_v21, 0.0  ;;  %v1874_v0 = vld [vmem:[%s2036_s25 + $0xa0] sm:$0xff] }
 0x2b2   : > { %v956_v29 = vpop.permute.xlu1 %955 }
 0x2b3   : > { %vm1039_vm3 = vcmp.eq.s32.totalorder %v2530_v40, %v956_v29  ;;  %v1083_v29 = vsel %vm1046_vm1, %v1874_v0, 0.0  ;;  %v1884_v0 = vld [vmem:[%s2036_s25 + $0x118] sm:$0xff] }
 0x2b4   : > { %v1076_v56 = vsel %vm1039_vm3, %v1866_v53, 0.0 }
 0x2b5   : > { %v1139_v58 = vsel %vm468_vm0, %v1076_v56, 0.0 }
 0x2b6   : > { %1140 = vadd.xlane.f32.xlu0 %v1139_v58  ;;  %v1160_v58 = vsel %vm468_vm0, %v1083_v29, 0.0 }
 0x2ba   : > { %v965_v27 = vpop.permute.xlu1 %964 }
 0x2bb   : > { %vm1042_vm5 = vcmp.eq.s32.totalorder %v2530_v40, %v965_v27  ;;  %v1876_v27 = vld [vmem:[%s2036_s25 + $0xe8] sm:$0xff] }
 0x2bc   : > { %v1079_v8 = vsel %vm1042_vm5, %v1868_v10, 0.0  ;;  %v1092_v1 = vsel %vm1055_vm6, %v1876_v27, 0.0  ;;  %vm1056_vm6 = vcmp.eq.s32.totalorder %v2530_v40, %v2849_v63 }
 0x2bd   : > { %v1148_v39 = vsel %vm468_vm0, %v1079_v8, 0.0  ;;  %v1187_v8 = vsel %vm468_vm0, %v1092_v1, 0.0 }
 0x2be   : > { %1143 = vadd.xlane.f32.xlu0 %v1142_v42  ;;  %v1084_v42 = vsel %vm1047_vm8, %v1877_v62, 0.0  ;;  %vm1059_vm8 = vcmp.eq.s32.totalorder %v2530_v40, %v2855_v25  ;;  %v1887_v62 = vld [vmem:[%s2036_s25 + $0x108] sm:$0xff] }
 0x2bf   : > { %v1163_v11 = vsel %vm468_vm0, %v1084_v42, 0.0  ;;  %v1096_v42 = vsel %vm1059_vm8, %v1887_v62, 0.0 }
 0x2c2   : > { %v974_v15 = vpop.permute.xlu1 %973 }
 0x2c3   : > { %vm1045_vm7 = vcmp.eq.s32.totalorder %v2530_v40, %v974_v15  ;;  %v1878_v15 = vld [vmem:[%s2036_s25 + $0xe0] sm:$0xff] }
 0x2c4   : > { %v1082_v45 = vsel %vm1045_vm7, %v1869_v34, 0.0  ;;  %vm1060_vm7 = vcmp.eq.s32.totalorder %v2530_v40, %v2881_v47 }
 0x2c5   : > { %v1157_v59 = vsel %vm468_vm0, %v1082_v45, 0.0  ;;  %v1879_v45 = vld [vmem:[%s2036_s25 + $0xb8] sm:$0xff] }
 0x2c6   : > { %1158 = vadd.xlane.f32.xlu1 %v1157_v59  ;;  %1149 = vadd.xlane.f32.xlu0 %v1148_v39  ;;  %v1880_v39 = vld [vmem:[%s2036_s25 + $0xf8] sm:$0xff] }
 0x2ca   : > { %v983_v51 = vpop.permute.xlu1 %982 }
 0x2cb   : > { %vm1048_vm10 = vcmp.eq.s32.totalorder %v2530_v40, %v983_v51 }
 0x2cc   : > { %v1085_v52 = vsel %vm1048_vm10, %v1871_v3, 0.0  ;;  %v1637_v3 = vsel %vm2892_vm2, 1.0, %v3577_v30  ;;  %vm1061_vm2 = vcmp.eq.s32.totalorder %v2530_v40, %v2890_v49  ;;  %v3616_v49 = vld [vmem:[#allocation28_spill] sm:$0xff] }
 0x2cd   : > { %v1166_v18 = vsel %vm468_vm0, %v1085_v52, 0.0  ;;  %v1465_v5 = vsel %vm1285_vm15, %v1637_v3, 0.0  ;;  %v1098_v29 = vsel %vm1061_vm2, %v1884_v0, 0.0 }
 0x2ce   : > { %1167 = vadd.xlane.f32.xlu2 %v1166_v18  ;;  %1152 = vadd.xlane.f32.xlu0 %v1151_v43  ;;  %v1881_v18 = vld [vmem:[%s2036_s25 + $0x110] sm:$0xff] }
 0x2cf   : > { %v1097_v43 = vsel %vm1060_vm7, %v1881_v18, 0.0 }
 0x2d0   : > { %v1202_v21 = vsel %vm468_vm0, %v1097_v43, 0.0  ;;  %v1817_v43 = vpop.eup %1816 }
 0x2d2   : > { %v986_v35 = vpop.permute.xlu1 %985 }
 0x2d3   : > { %vm1049_vm4 = vcmp.eq.s32.totalorder %v2530_v40, %v986_v35  ;;  %v1882_v35 = vld [vmem:[%s2036_s25 + $0xc8] sm:$0xff] }
 0x2d4   : > { %v1086_v59 = vsel %vm1049_vm4, %v1879_v45, 0.0  ;;  %v1088_v60 = vsel %vm1051_vm9, %v1882_v35, 0.0  ;;  %vm373_vm9 = vcmp.ne.s32.totalorder %v2790_v22, 4294967295  ;;  %v299_v22 = vadd.s32 136, %v2596_v46 }
 0x2d5   : > { %v1169_v13 = vsel %vm468_vm0, %v1086_v59, 0.0  ;;  %v1175_v38 = vsel %vm468_vm0, %v1088_v60, 0.0  ;;  %v301_v35 = vadd.s32 152, %v2596_v46  ;;  %v829_v60 = vmul.f32 0.6931472, %v1817_v43 }
 0x2d6   : > { %1173 = vadd.xlane.f32.xlu2 %v1172_v41  ;;  %1155 = vadd.xlane.f32.xlu0 %v1154_v12  ;;  %v295_v41 = vadd.s32 104, %v2596_v46  ;;  %v1466_v12 = vadd.f32 %v1465_v5, %v2870_v31  ;;  %v1205_v31 = vsel %vm468_vm0, %v1098_v29, 0.0  ;;  %v337_v19 = vadd.s32 %v2600_v2, %v299_v22  ;;  %v3610_v29 = vld [vmem:[#allocation29_spill] sm:$0xff] }
 0x2d7   : > { %1820 = vlog2.f32 %v3610_v29 }
 0x2da   : > { %v995_v6 = vpop.permute.xlu1 %994 }
 0x2db   : > { %vm1052_vm13 = vcmp.eq.s32.totalorder %v2530_v40, %v995_v6  ;;  %v333_v6 = vadd.s32 %v2600_v2, %v295_v41  ;;  %v1819_v41 = vpop.eup %1818 }
 0x2dc   : > { %v1089_v53 = vsel %vm1052_vm13, %v1875_v54, 0.0  ;;  %v1885_v54 = vld [vmem:[%s2036_s25 + $0xd8] sm:$0xff] }
 0x2dd   : > { %v1178_v56 = vsel %vm468_vm0, %v1089_v53, 0.0  ;;  %v1090_v53 = vsel %vm1053_vm11, %v1885_v54, 0.0  ;;  %vm407_vm1 = vcmp.lt.s32.totalorder %v333_v6, 300 }
 0x2de   : > { %1179 = vadd.xlane.f32.xlu2 %v1178_v56  ;;  %1161 = vadd.xlane.f32.xlu0 %v1160_v58  ;;  %vm2993_vm13 = vmand %vm370_vm14, %vm407_vm1  ;;  %v1181_v28 = vsel %vm468_vm0, %v1090_v53, 0.0  ;;  %v3611_v53 = vld [vmem:[#allocation32_spill] sm:$0xff]  ;;  %vm376_vm1 = vcmp.ne.s32.totalorder %v2794_v16, 4294967295 }
 0x2df   : > { %v1638_v24 = vsel %vm2993_vm13, 1.0, %v3577_v30  ;;  %1822 = vlog2.f32 %v3611_v53 }
 0x2e0   : > { %v1467_v56 = vsel %vm1285_vm15, %v1638_v24, 0.0  ;;  %1824 = vlog2.f32 %v3616_v49 }
 0x2e1   : > { %v1468_v58 = vadd.f32 %v1467_v56, %v1466_v12  ;;  %v3609_v12 = vld [vmem:[#allocation49_spill] sm:$0xff] }
 0x2e2   : > { %v1001_v50 = vpop.permute.xlu1 %1000  ;;  %vm375_vm14 = vcmp.ne.s32.totalorder %v3609_v12, 4294967295  ;;  %v3628_v12 = vld [vmem:[#allocation8_spill] sm:$0xff] }
 0x2e3   : > { %vm1054_vm3 = vcmp.eq.s32.totalorder %v2530_v40, %v1001_v50  ;;  %v1886_v50 = vld [vmem:[%s2036_s25 + $0xf0] sm:$0xff] }
 0x2e4   : > { %v1091_v10 = vsel %vm1054_vm3, %v1878_v15, 0.0  ;;  %v1093_v27 = vsel %vm1056_vm6, %v1886_v50, 0.0  ;;  %vm371_vm3 = vcmp.ne.s32.totalorder %v2575_v20, 4294967295 }
 0x2e5   : > { %v1184_v34 = vsel %vm468_vm0, %v1091_v10, 0.0  ;;  %v1190_v1 = vsel %vm468_vm0, %v1093_v27, 0.0  ;;  %v1199_v10 = vsel %vm468_vm0, %v1096_v42, 0.0  ;;  %v302_v42 = vadd.s32 160, %v2596_v46 }
 0x2e6   : > { %1188 = vadd.xlane.f32.xlu2 %v1187_v8  ;;  %1185 = vadd.xlane.f32.xlu1 %v1184_v34  ;;  %v296_v8 = vadd.s32 112, %v2596_v46  ;;  %v1888_v34 = vld [vmem:[%s2036_s25 + $0x120] sm:$0xff] }
 0x2e7   : > { %1164 = vadd.xlane.f32.xlu0 %v1163_v11 }
 0x2e8   : > { %v334_v63 = vadd.s32 %v2600_v2, %v296_v8  ;;  %v3618_v8 = vld [vmem:[#allocation5_spill] sm:$0xff] }
 0x2ea   : > { %v1010_v23 = vpop.permute.xlu1 %1009 }
 0x2eb   : > { %vm1057_vm5 = vcmp.eq.s32.totalorder %v2530_v40, %v1010_v23 }
 0x2ec   : > { %v1094_v51 = vsel %vm1057_vm5, %v1880_v39, 0.0  ;;  %vm408_vm5 = vcmp.lt.s32.totalorder %v334_v63, 300  ;;  %v298_v39 = vadd.s32 128, %v2596_v46 }
 0x2ed   : > { %v1193_v17 = vsel %vm468_vm0, %v1094_v51, 0.0  ;;  %vm3016_vm7 = vmand %vm371_vm3, %vm408_vm5 }
 0x2ee   : > { %1194 = vadd.xlane.f32.xlu1 %v1193_v17  ;;  %v1639_v25 = vsel %vm3016_vm7, 1.0, %v3577_v30  ;;  %v336_v51 = vadd.s32 %v2600_v2, %v298_v39 }
 0x2ef   : > { %1170 = vadd.xlane.f32.xlu0 %v1169_v13  ;;  %v1469_v45 = vsel %vm1285_vm15, %v1639_v25, 0.0  ;;  %v340_v25 = vadd.s32 %v2600_v2, %v302_v42  ;;  %v310_v13 = vadd.s32 224, %v2596_v46 }
 0x2f0   : > { %v1470_v20 = vadd.f32 %v1469_v45, %v1468_v58 }
 0x2f1   : > { %vm414_vm5 = vcmp.lt.s32.totalorder %v340_v25, 300  ;;  %v3631_v25 = vld [vmem:[#allocation9_spill] sm:$0xff] }
 0x2f2   : > { %v1013_v52 = vpop.permute.xlu1 %1012 }
 0x2f3   : > { %vm1058_vm10 = vcmp.eq.s32.totalorder %v2530_v40, %v1013_v52 }
 0x2f4   : > { %v1095_v47 = vsel %vm1058_vm10, %v1883_v61, 0.0  ;;  %vm410_vm10 = vcmp.lt.s32.totalorder %v336_v51, 300  ;;  %v3621_v51 = vld [vmem:[#allocation31_spill] sm:$0xff] }
 0x2f5   : > { %v1196_v14 = vsel %vm468_vm0, %v1095_v47, 0.0  ;;  %vm3033_vm2 = vmand %vm373_vm9, %vm410_vm10  ;;  %vm379_vm10 = vcmp.ne.s32.totalorder %v2806_v32, 4294967295 }
 0x2f6   : > { %1203 = vadd.xlane.f32.xlu1 %v1202_v21  ;;  %1197 = vadd.xlane.f32.xlu2 %v1196_v14  ;;  %v1641_v33 = vsel %vm3033_vm2, 1.0, %v3577_v30  ;;  %v300_v14 = vadd.s32 144, %v2596_v46 }
 0x2f7   : > { %1176 = vadd.xlane.f32.xlu0 %v1175_v38  ;;  %v1473_v52 = vsel %vm1285_vm15, %v1641_v33, 0.0  ;;  %v889_v38 = vadd.f32 %v829_v60, %v3608_v44  ;;  %v3625_v60 = vld [vmem:[#allocation34_spill] sm:$0xff]  ;;  %v3626_v44 = vld [vmem:[#allocation36_spill] sm:$0xff] }
 0x2f8   : > { %v338_v0 = vadd.s32 %v2600_v2, %v300_v14  ;;  %v303_v14 = vadd.s32 168, %v2596_v46 }
 0x2fa   : > { %v1025_v15 = vpop.permute.xlu1 %1024  ;;  %vm412_vm8 = vcmp.lt.s32.totalorder %v338_v0, 300 }
 0x2fb   : > { %vm1062_vm4 = vcmp.eq.s32.totalorder %v2530_v40, %v1025_v15  ;;  %v1640_v40 = vsel %vm2901_vm12, 1.0, %v3577_v30  ;;  %vm411_vm12 = vcmp.lt.s32.totalorder %v337_v19, 300  ;;  %vm3064_vm3 = vmand %vm375_vm14, %vm412_vm8  ;;  %v1821_v15 = vpop.eup %1820 }
 0x2fc   : > { %v1099_v11 = vsel %vm1062_vm4, %v1888_v34, 0.0  ;;  %v1471_v17 = vsel %vm1285_vm15, %v1640_v40, 0.0  ;;  %v1643_v58 = vsel %vm3064_vm3, 1.0, %v3577_v30  ;;  %v1823_v63 = vpop.eup %1822  ;;  %v3619_v34 = vld [vmem:[#allocation50_spill] sm:$0xff]  ;;  %v304_v40 = vadd.s32 176, %v2596_v46 }
 0x2fd   : > { %v1208_v59 = vsel %vm468_vm0, %v1099_v11, 0.0  ;;  %v1472_v3 = vadd.f32 %v1471_v17, %v1470_v20  ;;  %vm374_vm0 = vcmp.ne.s32.totalorder %v2583_v7, 4294967295  ;;  %v339_v7 = vadd.s32 %v2600_v2, %v301_v35  ;;  %v3620_v20 = vld [vmem:[#allocation35_spill] sm:$0xff] }
 0x2fe   : > { %1206 = vadd.xlane.f32.xlu2 %v1205_v31  ;;  %vm3046_vm11 = vmand %vm374_vm0, %vm411_vm12  ;;  %v831_v31 = vmul.f32 0.6931472, %v1819_v41  ;;  %v1477_v27 = vsel %vm1285_vm15, %v1643_v58, 0.0  ;;  %v835_v39 = vmul.f32 0.6931472, %v1821_v15  ;;  %v3629_v58 = vld [vmem:[#allocation37_spill] sm:$0xff] }
 0x2ff   : > { %1182 = vadd.xlane.f32.xlu0 %v1181_v28  ;;  %v1474_v18 = vadd.f32 %v1473_v52, %v1472_v3  ;;  %v1642_v61 = vsel %vm3046_vm11, 1.0, %v3577_v30  ;;  %vm413_vm6 = vcmp.lt.s32.totalorder %v339_v7, 300  ;;  %v841_v17 = vmul.f32 0.6931472, %v1823_v63  ;;  %v1825_v52 = vpop.eup %1824  ;;  %v1892_v28 = vld [vmem:[%s2413_s28 + $0xe8] sm:$0xff] }
 0x300   : > { %v1475_v47 = vsel %vm1285_vm15, %v1642_v61, 0.0  ;;  %vm3073_vm4 = vmand %vm376_vm1, %vm413_vm6  ;;  %v342_v7 = vadd.s32 %v2600_v2, %v304_v40  ;;  %v3634_v40 = vld [vmem:[#allocation39_spill] sm:$0xff]  ;;  %vm380_vm1 = vcmp.ne.s32.totalorder %v2816_v9, 4294967295 }
 0x301   : > { %v1476_v21 = vadd.f32 %v1475_v47, %v1474_v18  ;;  %v3624_v18 = vld [vmem:[#allocation33_spill] sm:$0xff]  ;;  %v1315_v47 = vsel %vm1285_vm15, %v2908_v26, 0.0  ;;  %v341_v26 = vadd.s32 %v2600_v2, %v303_v14 }
 0x302   : > { %vm416_vm0 = vcmp.lt.s32.totalorder %v342_v7, 300 }
 0x303   : > { %v1478_v62 = vadd.f32 %v1477_v27, %v1476_v21  ;;  %vm415_vm12 = vcmp.lt.s32.totalorder %v341_v26, 300 }
 0x307   : > { %1191 = vadd.xlane.f32.xlu0 %v1190_v1  ;;  %v1644_v1 = vsel %vm3073_vm4, 1.0, %v3577_v30 }
 0x30f   : > { %1200 = vadd.xlane.f32.xlu0 %v1199_v10  ;;  %v3617_v10 = vld [vmem:[#allocation30_spill] sm:$0xff] }
 0x310   : > { %1826 = vlog2.f32 %v3617_v10 }
 0x311   : > { %1828 = vlog2.f32 %v3620_v20 }
 0x312   : > { %1830 = vlog2.f32 %v3621_v51 }
 0x313   : > { %1832 = vlog2.f32 %v3624_v18  ;;  %v305_v18 = vadd.s32 184, %v2596_v46 }
 0x314   : > { %1834 = vlog2.f32 %v3625_v60 }
 0x315   : > { %1836 = vlog2.f32 %v3626_v44  ;;  %v343_v14 = vadd.s32 %v2600_v2, %v305_v18 }
 0x316   : > { %v1827_v35 = vpop.eup %1826  ;;  %1838 = vlog2.f32 %v3629_v58 }
 0x317   : > { %1209 = vadd.xlane.f32.xlu0 %v1208_v59  ;;  %v1479_v59 = vsel %vm1285_vm15, %v1644_v1, 0.0  ;;  %v1829_v29 = vpop.eup %1828  ;;  %v843_v53 = vmul.f32 0.6931472, %v1827_v35  ;;  %1840 = vlog2.f32 %v3634_v40 }
 0x318   : > { %v1480_v19 = vadd.f32 %v1479_v59, %v1478_v62  ;;  %v306_v62 = vadd.s32 192, %v2596_v46  ;;  %v847_v15 = vmul.f32 0.6931472, %v1829_v29 }
 0x329   : > { %v1141_v6 = vpop.xlane.xlu0 %1140 }
 0x32a   : > { %v1224_v54 = vsub.f32 %v889_v38, %v1141_v6  ;;  %v3627_v38 = vld [vmem:[#allocation10_spill] sm:$0xff]  ;;  %v892_v6 = vadd.f32 %v835_v39, %v3628_v12  ;;  %v308_v12 = vadd.s32 208, %v2596_v46 }
 0x32b   : > { %v895_v41 = vadd.f32 %v841_v17, %v3627_v38 }
 0x32c   : > { %v1261_v24 = vsel %vm2993_vm13, %v1224_v54, 0.0  ;;  %vm377_vm13 = vcmp.ne.s32.totalorder %v3619_v34, 4294967295  ;;  %v837_v54 = vmul.f32 0.6931472, %v1825_v52  ;;  %v3630_v34 = vld [vmem:[#allocation7_spill] sm:$0xff] }
 0x32d   : > { %v1311_v56 = vsel %vm1285_vm15, %v1261_v24, 0.0  ;;  %vm3093_vm9 = vmand %vm377_vm13, %vm414_vm5  ;;  %vm383_vm5 = vcmp.ne.s32.totalorder %v2832_v37, 4294967295 }
 0x32e   : > { %v1312_v50 = vadd.f32 %v1311_v56, %v2914_v57  ;;  %v890_v57 = vadd.f32 %v831_v31, %v3618_v8  ;;  %v1645_v43 = vsel %vm3093_vm9, 1.0, %v3577_v30  ;;  %v1831_v56 = vpop.eup %1830 }
 0x32f   : > { %v1481_v23 = vsel %vm1285_vm15, %v1645_v43, 0.0  ;;  %v1833_v1 = vpop.eup %1832  ;;  %v3637_v43 = vld [vmem:[#allocation40_spill] sm:$0xff] }
 0x330   : > { %v1482_v21 = vadd.f32 %v1481_v23, %v1480_v19  ;;  %v1835_v42 = vpop.eup %1834  ;;  %v849_v16 = vmul.f32 0.6931472, %v1833_v1  ;;  %1842 = vlog2.f32 %v3637_v43  ;;  %v3638_v19 = vld [vmem:[#allocation13_spill] sm:$0xff]  ;;  %v3639_v23 = vld [vmem:[#allocation42_spill] sm:$0xff] }
 0x331   : > { %v1144_v11 = vpop.xlane.xlu0 %1143  ;;  %v1837_v20 = vpop.eup %1836  ;;  %v898_v35 = vadd.f32 %v847_v15, %v3638_v19  ;;  %1844 = vlog2.f32 %v3639_v23  ;;  %v346_v15 = vadd.s32 %v2600_v2, %v308_v12  ;;  %v3651_v23 = vld [vmem:[#allocation18_spill] sm:$0xff]  ;;  %v1895_v12 = vld [vmem:[%s2413_s28 + $0x110] sm:$0xff] }
 0x332   : > { %v1225_v45 = vsub.f32 %v890_v57, %v1144_v11  ;;  %v839_v57 = vmul.f32 0.6931472, %v1831_v56  ;;  %v893_v11 = vadd.f32 %v837_v54, %v3630_v34  ;;  %v1839_v32 = vpop.eup %1838  ;;  %v3642_v56 = vld [vmem:[#allocation38_spill] sm:$0xff] }
 0x333   : > { %v1841_v29 = vpop.eup %1840  ;;  %v851_v54 = vmul.f32 0.6931472, %v1839_v32  ;;  %1846 = vlog2.f32 %v3642_v56 }
 0x334   : > { %v1262_v33 = vsel %vm3016_vm7, %v1225_v45, 0.0  ;;  %v3125_v45 = vadd.f32 %v843_v53, %v3631_v25  ;;  %v861_v34 = vmul.f32 0.6931472, %v1841_v29 }
 0x335   : > { %v1313_v22 = vsel %vm1285_vm15, %v1262_v33, 0.0  ;;  %v344_v33 = vadd.s32 %v2600_v2, %v306_v62 }
 0x336   : > { %v1314_v61 = vadd.f32 %v1313_v22, %v1312_v50  ;;  %v1889_v50 = vld [vmem:[%s2413_s28 + $0xa8] sm:$0xff]  ;;  %v845_v22 = vmul.f32 0.6931472, %v1835_v42  ;;  %v1843_v62 = vpop.eup %1842 }
 0x337   : > { %vm378_vm7 = vcmp.ne.s32.totalorder %v1889_v50, 4294967295  ;;  %vm418_vm8 = vcmp.lt.s32.totalorder %v344_v33, 300  ;;  %v3643_v50 = vld [vmem:[#allocation14_spill] sm:$0xff]  ;;  %v3650_v33 = vld [vmem:[#allocation43_spill] sm:$0xff] }
 0x338   : > { %v1316_v0 = vadd.f32 %v1315_v47, %v1314_v61  ;;  %vm3128_vm14 = vmand %vm378_vm7, %vm415_vm12  ;;  %v855_v61 = vmul.f32 0.6931472, %v1837_v20  ;;  %v307_v20 = vadd.s32 200, %v2596_v46  ;;  %1848 = vlog2.f32 %v3650_v33 }
 0x339   : > { %v1159_v31 = vpop.xlane.xlu1 %1158  ;;  %v1150_v24 = vpop.xlane.xlu0 %1149  ;;  %v1646_v51 = vsel %vm3128_vm14, 1.0, %v3577_v30  ;;  %vm420_vm7 = vcmp.lt.s32.totalorder %v346_v15, 300 }
 0x33a   : > { %v1230_v27 = vsub.f32 %v895_v41, %v1159_v31  ;;  %v1227_v49 = vsub.f32 %v892_v6, %v1150_v24  ;;  %v1483_v52 = vsel %vm1285_vm15, %v1646_v51, 0.0  ;;  %v1890_v6 = vld [vmem:[%s2413_s28 + $0xc0] sm:$0xff]  ;;  %v3641_v24 = vld [vmem:[#allocation12_spill] sm:$0xff]  ;;  %v345_v32 = vadd.s32 %v2600_v2, %v307_v20  ;;  %vm3222_vm12 = vmand %vm383_vm5, %vm420_vm7 }
 0x33b   : > { %v1484_v60 = vadd.f32 %v1483_v52, %v1482_v21  ;;  %vm381_vm6 = vcmp.ne.s32.totalorder %v1890_v6, 4294967295  ;;  %v3165_v26 = vadd.f32 %v849_v16, %v3641_v24  ;;  %v3649_v16 = vld [vmem:[#allocation17_spill] sm:$0xff]  ;;  %v3654_v6 = vld [vmem:[#allocation19_spill] sm:$0xff] }
 0x33c   : > { %v3118_v10 = vsel %vm3073_vm4, %v1230_v27, 0.0  ;;  %v1264_v8 = vsel %vm3033_vm2, %v1227_v49, 0.0  ;;  %vm3136_vm2 = vmand %vm379_vm10, %vm416_vm0  ;;  %vm417_vm4 = vcmp.lt.s32.totalorder %v343_v14, 300  ;;  %v3170_v27 = vadd.f32 %v845_v22, %v3643_v50 }
 0x33d   : > { %v1317_v63 = vsel %vm1285_vm15, %v1264_v8, 0.0  ;;  %v1647_v17 = vsel %vm3136_vm2, 1.0, %v3577_v30  ;;  %vm3174_vm13 = vmand %vm380_vm1, %vm417_vm4  ;;  %v3648_v8 = vld [vmem:[#allocation15_spill] sm:$0xff]  ;;  %v900_v40 = vadd.f32 %v851_v54, %v3649_v16  ;;  %vm419_vm0 = vcmp.lt.s32.totalorder %v345_v32, 300 }
 0x33e   : > { %v1318_v39 = vadd.f32 %v1317_v63, %v1316_v0  ;;  %v1485_v44 = vsel %vm1285_vm15, %v1647_v17, 0.0  ;;  %v3640_v0 = vld [vmem:[#allocation11_spill] sm:$0xff]  ;;  %v1648_v9 = vsel %vm3174_vm13, 1.0, %v3577_v30  ;;  %v1845_v63 = vpop.eup %1844  ;;  %v859_v17 = vmul.f32 0.6931472, %v1843_v62 }
 0x33f   : > { %v894_v21 = vadd.f32 %v839_v57, %v3640_v0  ;;  %v1486_v1 = vadd.f32 %v1485_v44, %v1484_v60  ;;  %v3186_v57 = vadd.f32 %v855_v61, %v3648_v8  ;;  %v1487_v25 = vsel %vm1285_vm15, %v1648_v9, 0.0  ;;  %v1891_v61 = vld [vmem:[%s2413_s28 + $0xc8] sm:$0xff] }
 0x340   : > { %v3205_v60 = vmul.f32 0.6931472, %v1845_v63  ;;  %vm382_vm10 = vcmp.ne.s32.totalorder %v1891_v61, 4294967295  ;;  %v3227_v0 = vadd.f32 %v859_v17, %v3654_v6  ;;  %v1323_v56 = vsel %vm1285_vm15, %v3118_v10, 0.0 }
 0x341   : > { %v1168_v47 = vpop.xlane.xlu2 %1167  ;;  %v1153_v7 = vpop.xlane.xlu0 %1152  ;;  %v1488_v51 = vadd.f32 %v1487_v25, %v1486_v1  ;;  %vm3237_vm1 = vmand %vm382_vm10, %vm419_vm0  ;;  %v309_v1 = vadd.s32 216, %v2596_v46  ;;  %v316_v9 = vadd.s32 272, %v2596_v46  ;;  %vm389_vm10 = vcmp.ne.s32.totalorder %v2859_v48, 4294967295 }
 0x342   : > { %v1233_v38 = vsub.f32 %v898_v35, %v1168_v47  ;;  %v1228_v41 = vsub.f32 %v893_v11, %v1153_v7  ;;  %v3203_v35 = vpop.eup %1846  ;;  %v3209_v47 = vadd.f32 %v861_v34, %v3651_v23  ;;  %v1650_v50 = vsel %vm3237_vm1, 1.0, %v3577_v30  ;;  %v1893_v34 = vld [vmem:[%s2413_s28 + $0xd8] sm:$0xff]  ;;  %v3663_v23 = vld [vmem:[#allocation45_spill] sm:$0xff] }
 0x343   : > { %v1849_v24 = vpop.eup %1848  ;;  %v347_v63 = vadd.s32 %v2600_v2, %v309_v1  ;;  %vm384_vm4 = vcmp.ne.s32.totalorder %v1893_v34, 4294967295  ;;  %v354_v17 = vadd.s32 %v2600_v2, %v316_v9  ;;  %1850 = vlog2.f32 %v3663_v23 }
 0x344   : > { %v3160_v53 = vsel %vm3136_vm2, %v1233_v38, 0.0  ;;  %v1265_v31 = vsel %vm3046_vm11, %v1228_v41, 0.0  ;;  %vm3180_vm11 = vmand %vm381_vm6, %vm418_vm8  ;;  %v348_v38 = vadd.s32 %v2600_v2, %v310_v13  ;;  %vm385_vm2 = vcmp.ne.s32.totalorder %v2840_v55, 4294967295  ;;  %v3672_v55 = vld [vmem:[#allocation22_spill] sm:$0xff] }
 0x345   : > { %v1319_v58 = vsel %vm1285_vm15, %v1265_v31, 0.0  ;;  %v1649_v11 = vsel %vm3180_vm11, 1.0, %v3577_v30  ;;  %v1651_v31 = vsel %vm3222_vm12, 1.0, %v3577_v30  ;;  %v3256_v16 = vmul.f32 0.6931472, %v1849_v24 }
 0x346   : > { %v1320_v5 = vadd.f32 %v1319_v58, %v1318_v39  ;;  %v311_v39 = vadd.s32 232, %v2596_v46  ;;  %v1489_v22 = vsel %vm1285_vm15, %v1649_v11, 0.0  ;;  %v314_v58 = vadd.s32 256, %v2596_v46 }
 0x347   : > { %v1490_v29 = vadd.f32 %v1489_v22, %v1488_v51  ;;  %vm422_vm8 = vcmp.lt.s32.totalorder %v348_v38, 300  ;;  %v1493_v11 = vsel %vm1285_vm15, %v1651_v31, 0.0  ;;  %vm421_vm7 = vcmp.lt.s32.totalorder %v347_v63, 300  ;;  %v1897_v63 = vld [vmem:[%s2413_s28 + $0x118] sm:$0xff] }
 0x348   : > { %v349_v44 = vadd.s32 %v2600_v2, %v311_v39  ;;  %vm3262_vm5 = vmand %vm385_vm2, %vm422_vm8  ;;  %v352_v39 = vadd.s32 %v2600_v2, %v314_v58  ;;  %v312_v22 = vadd.s32 240, %v2596_v46  ;;  %vm391_vm8 = vcmp.ne.s32.totalorder %v1895_v12, 4294967295  ;;  %v3678_v12 = vld [vmem:[#allocation41_spill] sm:$0xff] }
 0x349   : > { %v1174_v52 = vpop.xlane.xlu2 %1173  ;;  %v1156_v18 = vpop.xlane.xlu0 %1155  ;;  %v1653_v13 = vsel %vm3262_vm5, 1.0, %v3577_v30  ;;  %v315_v48 = vadd.s32 264, %v2596_v46 }
 0x34a   : > { %v1235_v43 = vsub.f32 %v900_v40, %v1174_v52  ;;  %v1229_v19 = vsub.f32 %v894_v21, %v1156_v18  ;;  %v313_v21 = vadd.s32 248, %v2596_v46  ;;  %vm423_vm6 = vcmp.lt.s32.totalorder %v349_v44, 300 }
 0x34c   : > { %v3213_v7 = vsel %vm3180_vm11, %v1235_v43, 0.0  ;;  %v1266_v14 = vsel %vm3064_vm3, %v1229_v19, 0.0  ;;  %vm386_vm3 = vcmp.ne.s32.totalorder %v1892_v28, 4294967295  ;;  %v351_v8 = vadd.s32 %v2600_v2, %v313_v21 }
 0x34d   : > { %v1321_v41 = vsel %vm1285_vm15, %v1266_v14, 0.0  ;;  %vm388_vm11 = vcmp.ne.s32.totalorder %v2847_v4, 4294967295  ;;  %vm3276_vm0 = vmand %vm386_vm3, %vm423_vm6  ;;  %v1497_v43 = vsel %vm1285_vm15, %v1653_v13, 0.0  ;;  %v317_v19 = vadd.s32 280, %v2596_v46  ;;  %v1894_v14 = vld [vmem:[%s2413_s28 + $0xf0] sm:$0xff] }
 0x34e   : > { %v1322_v54 = vadd.f32 %v1321_v41, %v1320_v5  ;;  %v1491_v5 = vsel %vm1285_vm15, %v1650_v50, 0.0  ;;  %vm425_vm2 = vcmp.lt.s32.totalorder %v351_v8, 300  ;;  %v1654_v18 = vsel %vm3276_vm0, 1.0, %v3577_v30 }
 0x34f   : > { %v1492_v10 = vadd.f32 %v1491_v5, %v1490_v29  ;;  %vm387_vm3 = vcmp.ne.s32.totalorder %v1894_v14, 4294967295  ;;  %vm3305_vm6 = vmand %vm388_vm11, %vm425_vm2  ;;  %v350_v41 = vadd.s32 %v2600_v2, %v312_v22  ;;  %v1499_v6 = vsel %vm1285_vm15, %v1654_v18, 0.0 }
 0x350   : > { %v1324_v62 = vadd.f32 %v1323_v56, %v1322_v54  ;;  %v1656_v28 = vsel %vm3305_vm6, 1.0, %v3577_v30  ;;  %v907_v13 = vadd.f32 %v3256_v16, %v3672_v55 }
 0x351   : > { %v1180_v42 = vpop.xlane.xlu2 %1179  ;;  %v1162_v15 = vpop.xlane.xlu0 %1161  ;;  %v1494_v33 = vadd.f32 %v1493_v11, %v1492_v10  ;;  %v1503_v8 = vsel %vm1285_vm15, %v1656_v28, 0.0  ;;  %v853_v28 = vmul.f32 0.6931472, %v3203_v35 }
 0x352   : > { %v1237_v25 = vsub.f32 %v3186_v57, %v1180_v42  ;;  %v1231_v20 = vsub.f32 %v3125_v45, %v1162_v15  ;;  %v1896_v42 = vld [vmem:[%s2413_s28 + $0x108] sm:$0xff]  ;;  %v1851_v10 = vpop.eup %1850 }
 0x354   : > { %v3270_v57 = vsel %vm3222_vm12, %v1237_v25, 0.0  ;;  %v1268_v45 = vsel %vm3093_vm9, %v1231_v20, 0.0  ;;  %vm3286_vm12 = vmand %vm384_vm4, %vm421_vm7  ;;  %vm426_vm9 = vcmp.lt.s32.totalorder %v352_v39, 300  ;;  %vm428_vm4 = vcmp.lt.s32.totalorder %v354_v17, 300  ;;  %v3673_v17 = vld [vmem:[#allocation46_spill] sm:$0xff] }
 0x355   : > { %v1325_v51 = vsel %vm1285_vm15, %v1268_v45, 0.0  ;;  %v1652_v32 = vsel %vm3286_vm12, 1.0, %v3577_v30  ;;  %vm3320_vm11 = vmand %vm389_vm10, %vm426_vm9  ;;  %vm424_vm7 = vcmp.lt.s32.totalorder %v350_v41, 300  ;;  %vm390_vm10 = vcmp.ne.s32.totalorder %v1896_v42, 4294967295 }
 0x356   : > { %v1326_v52 = vadd.f32 %v1325_v51, %v1324_v62  ;;  %v1495_v61 = vsel %vm1285_vm15, %v1652_v32, 0.0  ;;  %v1657_v50 = vsel %vm3320_vm11, 1.0, %v3577_v30  ;;  %vm3330_vm2 = vmand %vm387_vm3, %vm424_vm7  ;;  %v353_v20 = vadd.s32 %v2600_v2, %v315_v48 }
 0x357   : > { %v1496_v38 = vadd.f32 %v1495_v61, %v1494_v33  ;;  %v1655_v62 = vsel %vm3330_vm2, 1.0, %v3577_v30  ;;  %v1505_v40 = vsel %vm1285_vm15, %v1657_v50, 0.0  ;;  %v1329_v45 = vsel %vm1285_vm15, %v3160_v53, 0.0 }
 0x358   : > { %v1501_v9 = vsel %vm1285_vm15, %v1655_v62, 0.0  ;;  %vm427_vm9 = vcmp.lt.s32.totalorder %v353_v20, 300  ;;  %1852 = vlog2.f32 %v3673_v17  ;;  %vm393_vm3 = vcmp.ne.s32.totalorder %v2878_v36, 4294967295  ;;  %v3682_v36 = vld [vmem:[#allocation25_spill] sm:$0xff]  ;;  %v3685_v17 = vld [vmem:[#allocation24_spill] sm:$0xff] }
 0x359   : > { %v1189_v21 = vpop.xlane.xlu2 %1188  ;;  %v1186_v29 = vpop.xlane.xlu1 %1185  ;;  %v1498_v56 = vadd.f32 %v1497_v43, %v1496_v38  ;;  %v318_v32 = vadd.s32 288, %v2596_v46  ;;  %1854 = vlog2.f32 %v3678_v12  ;;  %v1333_v50 = vsel %vm1285_vm15, %v3213_v7, 0.0 }
 0x35a   : > { %v1240_v4 = vsub.f32 %v3209_v47, %v1189_v21  ;;  %v1239_v54 = vsub.f32 %v3227_v0, %v1186_v29  ;;  %v1165_v31 = vpop.xlane.xlu0 %1164  ;;  %v355_v47 = vadd.s32 %v2600_v2, %v317_v19 }
 0x35b   : > { %v1232_v58 = vsub.f32 %v3170_v27, %v1165_v31  ;;  %v1500_v5 = vadd.f32 %v1499_v6, %v1498_v56  ;;  %v356_v41 = vadd.s32 %v2600_v2, %v318_v32  ;;  %v871_v6 = vmul.f32 0.6931472, %v1851_v10  ;;  %v3686_v32 = vld [vmem:[#allocation20_spill] sm:$0xff] }
 0x35c   : > { %v3337_v1 = vsel %vm3276_vm0, %v1240_v4, 0.0  ;;  %v3341_v27 = vsel %vm3262_vm5, %v1239_v54, 0.0  ;;  %vm392_vm0 = vcmp.ne.s32.totalorder %v1897_v63, 4294967295  ;;  %vm3355_vm5 = vmand %vm391_vm8, %vm428_vm4 }
 0x35d   : > { %v1269_v15 = vsel %vm3128_vm14, %v1232_v58, 0.0  ;;  %v1502_v25 = vadd.f32 %v1501_v9, %v1500_v5  ;;  %v1659_v39 = vsel %vm3355_vm5, 1.0, %v3577_v30  ;;  %vm429_vm14 = vcmp.lt.s32.totalorder %v355_v47, 300  ;;  %vm3371_vm8 = vmand %vm390_vm10, %vm427_vm9  ;;  %v3681_v58 = vld [vmem:[#allocation21_spill] sm:$0xff] }
 0x35e   : > { %v1327_v34 = vsel %vm1285_vm15, %v1269_v15, 0.0  ;;  %v1509_v43 = vsel %vm1285_vm15, %v1659_v39, 0.0  ;;  %vm3378_vm4 = vmand %vm392_vm0, %vm429_vm14  ;;  %v1658_v19 = vsel %vm3371_vm8, 1.0, %v3577_v30  ;;  %vm430_vm7 = vcmp.lt.s32.totalorder %v356_v41, 300  ;;  %v1853_v31 = vpop.eup %1852  ;;  %v3683_v15 = vld [vmem:[#allocation16_spill] sm:$0xff] }
 0x35f   : > { %v1328_v59 = vadd.f32 %v1327_v34, %v1326_v52  ;;  %v1504_v51 = vadd.f32 %v1503_v8, %v1502_v25  ;;  %v1660_v14 = vsel %vm3378_vm4, 1.0, %v3577_v30  ;;  %v1507_v38 = vsel %vm1285_vm15, %v1658_v19, 0.0  ;;  %vm3402_vm10 = vmand %vm393_vm3, %vm430_vm7  ;;  %v1855_v10 = vpop.eup %1854 }
 0x360   : > { %v1511_v44 = vsel %vm1285_vm15, %v1660_v14, 0.0  ;;  %v908_v35 = vadd.f32 %v3205_v60, %v3681_v58  ;;  %v1661_v49 = vsel %vm3402_vm10, 1.0, %v3577_v30  ;;  %v910_v47 = vadd.f32 %v871_v6, %v3682_v36  ;;  %v3684_v30 = vld [vmem:[#allocation44_spill] sm:$0xff]  ;;  %v3688_v6 = vld [vmem:[#allocation23_spill] sm:$0xff] }
 0x361   : > { %v1195_v33 = vpop.xlane.xlu1 %1194  ;;  %v1330_v52 = vadd.f32 %v1329_v45, %v1328_v59  ;;  %v1506_v61 = vadd.f32 %v1505_v40, %v1504_v51  ;;  %v1513_v62 = vsel %vm1285_vm15, %v1661_v49, 0.0  ;;  %v901_v8 = vadd.f32 %v853_v28, %v3683_v15  ;;  %v3690_v49 = vld [vmem:[#allocation26_spill] sm:$0xff] }
 0x362   : > { %v1242_v22 = vsub.f32 %v907_v13, %v1195_v33  ;;  %v1171_v53 = vpop.xlane.xlu0 %1170  ;;  %1856 = vlog2.f32 %v3684_v30  ;;  %v873_v59 = vmul.f32 0.6931472, %v1853_v31  ;;  %v857_v39 = vmul.f32 0.6931472, %v1855_v10 }
 0x363   : > { %v1234_v23 = vsub.f32 %v3165_v26, %v1171_v53  ;;  %v1508_v29 = vadd.f32 %v1507_v38, %v1506_v61  ;;  %v1337_v51 = vsel %vm1285_vm15, %v3270_v57, 0.0  ;;  %v3687_v61 = vld [vmem:[#allocation47_spill] sm:$0xff]  ;;  %v1341_v41 = vsel %vm1285_vm15, %v3341_v27, 0.0 }
 0x364   : > { %v3394_v21 = vsel %vm3305_vm6, %v1242_v22, 0.0  ;;  %v911_v33 = vadd.f32 %v873_v59, %v3685_v17  ;;  %v903_v24 = vadd.f32 %v857_v39, %v3686_v32  ;;  %1858 = vlog2.f32 %v3687_v61 }
 0x365   : > { %v1271_v26 = vsel %vm3174_vm13, %v1234_v23, 0.0  ;;  %v1510_v54 = vadd.f32 %v1509_v43, %v1508_v29  ;;  %v1347_v27 = vsel %vm1285_vm15, %v3394_v21, 0.0  ;;  %vm1524_vm13 = vcmp.eq.s32.totalorder %v2596_v46, 0 }
 0x366   : > { %v1331_v4 = vsel %vm1285_vm15, %v1271_v26, 0.0  ;;  %v1343_v26 = vsel %vm1285_vm15, %v3337_v1, 0.0 }
 0x367   : > { %v1332_v56 = vadd.f32 %v1331_v4, %v1330_v52  ;;  %v1512_v48 = vadd.f32 %v1511_v44, %v1510_v54  ;;  %v3689_v44 = vld [vmem:[#allocation48_spill] sm:$0xff] }
 0x368   : > { %v1857_v53 = vpop.eup %1856  ;;  %1860 = vlog2.f32 %v3689_v44 }
 0x369   : > { %v1198_v5 = vpop.xlane.xlu2 %1197  ;;  %v1204_v42 = vpop.xlane.xlu1 %1203  ;;  %v1334_v9 = vadd.f32 %v1333_v50, %v1332_v56  ;;  %v1514_v25 = vadd.f32 %v1513_v62, %v1512_v48  ;;  %v863_v23 = vmul.f32 0.6931472, %v1857_v53 }
 0x36a   : > { %v1243_v63 = vsub.f32 %v908_v35, %v1198_v5  ;;  %v1245_v60 = vsub.f32 %v910_v47, %v1204_v42  ;;  %v1177_v34 = vpop.xlane.xlu0 %1176  ;;  %v1859_v28 = vpop.eup %1858 }
 0x36b   : > { %v1236_v20 = vsub.f32 %v901_v8, %v1177_v34  ;;  %1515 = vadd.xlane.f32.xlu2 %v1514_v25  ;;  %v906_v29 = vadd.f32 %v863_v23, %v3688_v6  ;;  %v869_v3 = vmul.f32 0.6931472, %v1859_v28 }
 0x36c   : > { %v1280_v7 = vsel %vm3320_vm11, %v1243_v63, 0.0  ;;  %v1282_v40 = vsel %vm3355_vm5, %v1245_v60, 0.0 }
 0x36d   : > { %v1273_v45 = vsel %vm3237_vm1, %v1236_v20, 0.0  ;;  %v909_v50 = vadd.f32 %v869_v3, %v3690_v49  ;;  %v1349_v1 = vsel %vm1285_vm15, %v1280_v7, 0.0  ;;  %v1353_v8 = vsel %vm1285_vm15, %v1282_v40, 0.0 }
 0x36e   : > { %v1335_v55 = vsel %vm1285_vm15, %v1273_v45, 0.0  ;;  %v1861_v36 = vpop.eup %1860 }
 0x36f   : > { %v1336_v13 = vadd.f32 %v1335_v55, %v1334_v9  ;;  %v875_v5 = vmul.f32 0.6931472, %v1861_v36  ;;  %v3691_v9 = vld [vmem:[#allocation27_spill] sm:$0xff] }
 0x371   : > { %v1207_v52 = vpop.xlane.xlu2 %1206  ;;  %v1338_v22 = vadd.f32 %v1337_v51, %v1336_v13  ;;  %v912_v21 = vadd.f32 %v875_v5, %v3691_v9 }
 0x372   : > { %v1246_v11 = vsub.f32 %v911_v33, %v1207_v52  ;;  %v1183_v43 = vpop.xlane.xlu0 %1182 }
 0x373   : > { %v1238_v19 = vsub.f32 %v903_v24, %v1183_v43 }
 0x374   : > { %v1283_v37 = vsel %vm3378_vm4, %v1246_v11, 0.0 }
 0x375   : > { %v1275_v14 = vsel %vm3286_vm12, %v1238_v19, 0.0  ;;  %v1355_v63 = vsel %vm1285_vm15, %v1283_v37, 0.0 }
 0x376   : > { %v1339_v57 = vsel %vm1285_vm15, %v1275_v14, 0.0 }
 0x377   : > { %v1340_v38 = vadd.f32 %v1339_v57, %v1338_v22 }
 0x379   : > { %v1342_v12 = vadd.f32 %v1341_v41, %v1340_v38 }
 0x37a   : > { %v1192_v4 = vpop.xlane.xlu0 %1191 }
 0x37b   : > { %v1344_v16 = vadd.f32 %v1343_v26, %v1342_v12  ;;  %v1241_v54 = vsub.f32 %v906_v29, %v1192_v4 }
 0x37d   : > { %v1278_v31 = vsel %vm3330_vm2, %v1241_v54, 0.0 }
 0x37e   : > { %v1345_v56 = vsel %vm1285_vm15, %v1278_v31, 0.0 }
 0x37f   : > { %v1346_v58 = vadd.f32 %v1345_v56, %v1344_v16 }
 0x381   : > { %v1348_v35 = vadd.f32 %v1347_v27, %v1346_v58 }
 0x382   : > { %v1201_v47 = vpop.xlane.xlu0 %1200 }
 0x383   : > { %v1350_v48 = vadd.f32 %v1349_v1, %v1348_v35  ;;  %v1244_v62 = vsub.f32 %v909_v50, %v1201_v47 }
 0x385   : > { %v1281_v0 = vsel %vm3371_vm8, %v1244_v62, 0.0 }
 0x386   : > { %v1351_v42 = vsel %vm1285_vm15, %v1281_v0, 0.0 }
 0x387   : > { %v1352_v15 = vadd.f32 %v1351_v42, %v1350_v48 }
 0x389   : > { %v1354_v10 = vadd.f32 %v1353_v8, %v1352_v15 }
 0x38a   : > { %v1210_v60 = vpop.xlane.xlu0 %1209 }
 0x38b   : > { %v1247_v34 = vsub.f32 %v912_v21, %v1210_v60  ;;  %v1356_v25 = vadd.f32 %v1355_v63, %v1354_v10 }
 0x38d   : > { %v1284_v20 = vsel %vm3402_vm10, %v1247_v34, 0.0 }
 0x38e   : > { %v1357_v30 = vsel %vm1285_vm15, %v1284_v20, 0.0  ;;  %vm1525_vm15 = vcmp.eq.s32.totalorder %v2596_v46, 1 }
 0x38f   : > { %v1358_v18 = vadd.f32 %v1357_v30, %v1356_v25 }
 0x391   : > { %1359 = vadd.xlane.f32.xlu1 %v1358_v18 }
 0x3de   : > { %v1516_v59 = vpop.xlane.xlu2 %1515 }
 0x3df   : > { %v1517_v7 = vrot.slane %v1516_v59, 4 }
 0x3e1   : > { %v1518_v39 = vadd.f32 %v1517_v7, %v1516_v59 }
 0x3e3   : > { %v1519_v40 = vrot.slane %v1518_v39, 2 }
 0x3e5   : > { %v1520_v51 = vadd.f32 %v1519_v40, %v1518_v39 }
 0x3e7   : > { %v1521_v52 = vrot.slane %v1520_v51, 1 }
 0x3e9   : > { %v1522_v24 = vadd.f32 %v1521_v52, %v1520_v51 }
 0x404   : > { %v1360_v45 = vpop.xlane.xlu1 %1359 }
 0x405   : > { %v1361_v55 = vrot.slane %v1360_v45, 4 }
 0x407   : > { %v1362_v13 = vadd.f32 %v1361_v55, %v1360_v45 }
 0x409   : > { %v1363_v17 = vrot.slane %v1362_v13, 2 }
 0x40b   : > { %v1364_v33 = vadd.f32 %v1363_v17, %v1362_v13 }
 0x40d   : > { %v1365_v32 = vrot.slane %v1364_v33, 1 }
 0x40f   : > { %v1366_v2 = vadd.f32 %v1365_v32, %v1364_v33 }
 0x411   : > { %1666 = vpush %v1366_v2 }
 0x412   : > { %1668 = vpush %v1522_v24 }
 0x442   : > { %s1667_s16 = spop %1666 }
 0x443   : > { %v1528_v22 = vstv %s1667_s16  ;;  %s1669_s21 = spop %1668 }
 0x444   : > { %v1526_v53 = vstv %s1669_s21 }
 0x445   : > { %v1527_v11 = vsel %vm1525_vm15, %v1526_v53, 0.0 }
 0x446   : > { %v1529_v43 = vsel %vm1524_vm13, %v1528_v22, %v1527_v11 }
 0x447   : > { %1530 = vst [vmem:[%s177_s8] sm:$0xff] %v1529_v43 }
 0x448   : > { %1925 = shalt.err (!%p1922_p3)
}
 0x449   : > { %1670 = dma.vmem_to_hbm [thread:$0]  (%p2017_p5), %s1545_s14, 128, %s1547_s17, %s1532_s13  }
 0x44a PF: > { %p1676_p4 = scmp.ge.s32.totalorder %s1960_s12, 2  ;;  %s1558_s29 = sand.u32 1, %s1948_s9  }
 0x44b   : > { %s1559_s30 = scalar_lea.sflag [#allocation3], %s1558_s29 }
 0x44c   : > { %p1673_p7 = pnand %p1676_p4, %p2021_p6 }
 0x44e   : > { %p1674_p8 = pneg %p1673_p7 }
 0x450   : > { %1943 = dma.done.wait (%p1674_p8), %s1559_s30, 128  }
 0x451   : > { %1945 = vsyncadd (%p1674_p8), %s1559_s30, 4294967168  ;;  %p12_p9 = scmp.ge.s32.totalorder %s2004_s15, 4   ;;  %s3692_s9 = smov %s1952_s10 }
 0x452   : > { %s3693_s10 = smov %s1956_s11  ;;  %s3694_s11 = smov %s2015_s18 }
 0x453   : > { %s3695_s12 = smov %s2004_s15  ;;  %14 = sbr.rel (!%p12_p9) target bundleno = 3 (0x3), region = 66 }
 0x458   :  { %1565 = vsyncpa [#allocation3], 1 }
 0x459   :  { %1567 = vsyncpa [#allocation3 + $0x1], 1 }

</bundles_post_ra>
